<compile_context>
chip_gen: v6e
topology: v6e:2x2x1
jax: 0.10.0
libtpu: 0.0.40
codegen_flags: <defaults>
</compile_context>

<pallas_src>
import functools
import math

import jax
import jax.numpy as jnp
import numpy as np
from jax import lax
from jax.experimental import pallas as pl
from jax.experimental.pallas import tpu as pltpu


def gru_chunk_kernel(gi_ref, len_ref, whh_ref, bhh_n_ref, h0_ref,
                     out_ref, hlast_ref):
    """One chunk of Tc GRU time steps per grid iteration.

    gi_ref   : (Tc, B, 3H) f32  precomputed x @ W_ih^T + b_ih (+ b_hh[r,z])
    len_ref  : (B, 1)      i32  sequence lengths (resident, loaded once)
    whh_ref  : (H, 3H)          W_hh^T (resident; f32 or bf16)
    bhh_n_ref: (1, H)      f32  b_hn (only hh-bias that cannot be pre-folded)
    h0_ref   : (B, H)      f32  initial hidden state
    out_ref  : (Tc, B, H)  f32  masked per-step hidden states
    hlast_ref: (B, H)      f32  carried / last-valid hidden (resident output)
    """
    c = pl.program_id(0)
    tc = gi_ref.shape[0]
    b = hlast_ref.shape[0]
    h_dim = hlast_ref.shape[1]

    @pl.when(c == 0)
    def _():
        hlast_ref[...] = h0_ref[...]

    whh = whh_ref[...]
    lens = len_ref[...]                                      # (B, 1) int32
    bhh_n = jnp.broadcast_to(bhh_n_ref[...], (b, h_dim))     # hoisted broadcast
    t0 = c * tc

    def step(tt, h):
        g = gi_ref[tt]                                       # (B, 3H) f32
        gh = jnp.dot(h.astype(whh.dtype), whh,
                     preferred_element_type=jnp.float32)     # (B, 3H)
        r = jax.nn.sigmoid(g[:, :h_dim] + gh[:, :h_dim])
        z = jax.nn.sigmoid(g[:, h_dim:2 * h_dim] + gh[:, h_dim:2 * h_dim])
        n = jnp.tanh(g[:, 2 * h_dim:] + r * (gh[:, 2 * h_dim:] + bhh_n))
        h_new = (1.0 - z) * n + z * h
        m = (t0 + tt < lens).astype(jnp.float32)             # (B, 1) mask
        out_ref[tt] = (m * h_new).astype(out_ref.dtype)
        return m * h_new + (1.0 - m) * h                     # freeze past seq end

    hlast_ref[...] = lax.fori_loop(0, tc, step, hlast_ref[...], unroll=True)


@functools.partial(jax.jit, static_argnames=("max_len", "time_chunk", "matmul_dtype"))
def context_rnn_forward(encoder_hidden, conversation_length,
                        w_ih, w_hh, b_ih, b_hh, h0=None, *,
                        max_len=None, time_chunk=8, matmul_dtype=jnp.float32):
    """Pallas equivalent of ContextRNN.forward (GRU, num_layers=1, unidirectional).

    encoder_hidden     : [B, T, input_size] float32
    conversation_length: [B] int32
    h0                 : optional [B, H] initial hidden (VHCR's context_init)
    Returns (outputs [B, max_len, H], hidden [1, B, H]).
    """
    B, T, I = encoder_hidden.shape
    H = w_hh.shape[1]
    G = 3 * H
    md = matmul_dtype

    tc = max(1, min(int(time_chunk), T))
    num_chunks = pl.cdiv(T, tc)
    Tp = num_chunks * tc

    w_ihT = jnp.asarray(w_ih, jnp.float32).T      # (I, 3H)
    w_hhT = jnp.asarray(w_hh, jnp.float32).T      # (H, 3H)
    b_ih = jnp.asarray(b_ih, jnp.float32)
    b_hh = jnp.asarray(b_hh, jnp.float32)
    if h0 is None:
        h0 = jnp.zeros((B, H), jnp.float32)
    else:
        h0 = jnp.asarray(h0, jnp.float32)

    # Fold b_ih (all gates) and b_hh (r, z gates) into the hoisted projection;
    # only b_hn must stay inside the recurrence (it is scaled by r).
    bias_fused = b_ih + jnp.concatenate([b_hh[:2 * H], jnp.zeros((H,), jnp.float32)])
    bhh_n = b_hh[2 * H:][None, :]                 # (1, H)

    # Hoisted, time-independent input projection: one big MXU matmul
    # (M = T*B rows) instead of T tiny per-step matmuls in the kernel.
    gi = jnp.einsum("bti,ig->tbg",
                    encoder_hidden.astype(md), w_ihT.astype(md),
                    preferred_element_type=jnp.float32)
    gi = gi + bias_fused[None, None, :]           # [T, B, 3H]
    if Tp > T:
        gi = jnp.pad(gi, ((0, Tp - T), (0, 0), (0, 0)))

    lens = jnp.asarray(conversation_length, jnp.int32).reshape(B, 1)
    whh_in = w_hhT.astype(md)

    # Explicit VMEM budget: double-buffered gi/out chunks + resident weights,
    # with headroom, capped well under v7x's 64 MiB physical VMEM.
    w_bytes = jnp.dtype(md).itemsize
    est = (2 * tc * B * G * 4 + 2 * tc * B * H * 4 + 2 * H * G * w_bytes
           + 4 * (B * H + B + H) * 4)
    vmem_limit = int(min(max(4 * est, 16 * 1024 * 1024), 32 * 1024 * 1024))

    outs_tm, hlast = pl.pallas_call(
        gru_chunk_kernel,
        out_shape=(jax.ShapeDtypeStruct((Tp, B, H), jnp.float32),
                   jax.ShapeDtypeStruct((B, H), jnp.float32)),
        grid_spec=pltpu.PrefetchScalarGridSpec(
            num_scalar_prefetch=0,
            grid=(num_chunks,),
            in_specs=[
                pl.BlockSpec((tc, B, G), lambda c: (c, 0, 0)),   # gi chunk
                pl.BlockSpec((B, 1), lambda c: (0, 0)),          # lengths (resident)
                pl.BlockSpec((H, G), lambda c: (0, 0)),          # W_hh^T (resident)
                pl.BlockSpec((1, H), lambda c: (0, 0)),          # b_hn  (resident)
                pl.BlockSpec((B, H), lambda c: (0, 0)),          # h0    (resident)
            ],
            out_specs=[
                pl.BlockSpec((tc, B, H), lambda c: (c, 0, 0)),   # outputs chunk
                pl.BlockSpec((B, H), lambda c: (0, 0)),          # hidden (resident)
            ],
        ),
        compiler_params=pltpu.CompilerParams(
            # Single sequential time-chunk axis. TODO(synk): for large batches
            # on v7x, add a leading "parallel" batch-tile grid axis to use both
            # TensorCores; neutral on v5e/v6e so not done at these sizes.
            dimension_semantics=("arbitrary",),
            vmem_limit_bytes=vmem_limit,
        ),
    )(gi, lens, whh_in, bhh_n, h0)

    out_len = T if max_len is None else int(max_len)
    outputs = jnp.transpose(outs_tm[:out_len], (1, 0, 2))   # [B, out_len, H]
    hidden = hlast[None, ...]                               # [1, B, H]
    return outputs, hidden


def _reference_forward(encoder_hidden, conversation_length,
                       w_ih, w_hh, b_ih, b_hh, h0=None, max_len=None):
    """Pure-JAX reference (masked GRU scan, PyTorch gate order r,z,n)."""
    B, T, I = encoder_hidden.shape
    H = w_hh.shape[1]
    if h0 is None:
        h0 = jnp.zeros((B, H), jnp.float32)

    def cell(h, xt_mt):
        xt, mt = xt_mt
        gi = xt @ w_ih.T + b_ih
        gh = h @ w_hh.T + b_hh
        r = jax.nn.sigmoid(gi[:, :H] + gh[:, :H])
        z = jax.nn.sigmoid(gi[:, H:2 * H] + gh[:, H:2 * H])
        n = jnp.tanh(gi[:, 2 * H:] + r * gh[:, 2 * H:])
        h_new = (1.0 - z) * n + z * h
        h_carry = mt * h_new + (1.0 - mt) * h
        return h_carry, mt * h_new

    x_tm = jnp.transpose(encoder_hidden, (1, 0, 2))
    t_ids = jnp.arange(T)[:, None]
    mask = (t_ids < conversation_length[None, :]).astype(jnp.float32)[..., None]
    h_last, outs = lax.scan(cell, h0, (x_tm, mask))
    out_len = T if max_len is None else int(max_len)
    return jnp.transpose(outs[:out_len], (1, 0, 2)), h_last[None, ...]


if __name__ == "__main__":
    # Small shapes consistent with ContextRNN(input_size, context_size).
    B, T, I, H = 4, 12, 32, 32

    key = jax.random.PRNGKey(0)
    k_x, k_h, k1, k2, k3, k4 = jax.random.split(key, 6)

    encoder_hidden = jax.random.normal(k_x, (B, T, I), dtype=jnp.float32)
    lengths_np = np.array([12, 3, 7, 1], dtype=np.int32)      # host values -> static max_len
    conversation_length = jnp.asarray(lengths_np)
    max_len = int(lengths_np.max())

    # Deterministic GRU parameter init, PyTorch-style U(-1/sqrt(H), 1/sqrt(H)).
    bound = 1.0 / math.sqrt(H)
    w_ih = jax.random.uniform(k1, (3 * H, I), minval=-bound, maxval=bound, dtype=jnp.float32)
    w_hh = jax.random.uniform(k2, (3 * H, H), minval=-bound, maxval=bound, dtype=jnp.float32)
    b_ih = jax.random.uniform(k3, (3 * H,), minval=-bound, maxval=bound, dtype=jnp.float32)
    b_hh = jax.random.uniform(k4, (3 * H,), minval=-bound, maxval=bound, dtype=jnp.float32)
    # Non-zero initial hidden, mimicking VHCR's context_init from z_conv2context.
    h0 = 0.1 * jax.random.normal(k_h, (B, H), dtype=jnp.float32)

    # f32 MXU path (tight check against the reference).
    outputs, hidden = context_rnn_forward(
        encoder_hidden, conversation_length, w_ih, w_hh, b_ih, b_hh, h0,
        max_len=max_len, time_chunk=8, matmul_dtype=jnp.float32)
    jax.block_until_ready((outputs, hidden))

    ref_out, ref_hid = _reference_forward(
        encoder_hidden, conversation_length, w_ih, w_hh, b_ih, b_hh, h0, max_len=max_len)

    np.testing.assert_allclose(np.asarray(outputs), np.asarray(ref_out), rtol=1e-5, atol=2e-5)
    np.testing.assert_allclose(np.asarray(hidden), np.asarray(ref_hid), rtol=1e-5, atol=2e-5)

    # bf16 MXU-operand path (v5e/v6e/v7x recommendation); gate math stays f32.
    out_bf, hid_bf = context_rnn_forward(
        encoder_hidden, conversation_length, w_ih, w_hh, b_ih, b_hh, h0,
        max_len=max_len, time_chunk=8, matmul_dtype=jnp.bfloat16)
    jax.block_until_ready((out_bf, hid_bf))
    np.testing.assert_allclose(np.asarray(out_bf), np.asarray(ref_out), rtol=5e-2, atol=5e-2)
    np.testing.assert_allclose(np.asarray(hid_bf), np.asarray(ref_hid), rtol=5e-2, atol=5e-2)

    print("KERNEL_OK")
</pallas_src>

<mosaic_0001>
module attributes {stable_mosaic.version = 11 : i64} {
  func.func @gru_chunk_kernel(%arg0: i32, %arg1: memref<8x4x96xf32, #tpu.memory_space<vmem>>, %arg2: memref<4x1xi32, #tpu.memory_space<vmem>>, %arg3: memref<32x96xf32, #tpu.memory_space<vmem>>, %arg4: memref<1x32xf32, #tpu.memory_space<vmem>>, %arg5: memref<4x32xf32, #tpu.memory_space<vmem>>, %arg6: memref<8x4x32xf32, #tpu.memory_space<vmem>>, %arg7: memref<4x32xf32, #tpu.memory_space<vmem>>) attributes {dimension_semantics = [#tpu.dimension_semantics<arbitrary>], iteration_bounds = array<i64: 2>, scalar_prefetch = 0 : i64, scratch_operands = 0 : i64, tpu.core_type = #tpu.core_type<tc>, window_params = [{transform_indices = @transform_0, window_bounds = array<i64: 8, 4, 96>}, {pipeline_mode = #tpu.pipeline_mode<synchronous>, transform_indices = @transform_1, window_bounds = array<i64: 4, 1>}, {pipeline_mode = #tpu.pipeline_mode<synchronous>, transform_indices = @transform_2, window_bounds = array<i64: 32, 96>}, {pipeline_mode = #tpu.pipeline_mode<synchronous>, transform_indices = @transform_3, window_bounds = array<i64: 1, 32>}, {pipeline_mode = #tpu.pipeline_mode<synchronous>, transform_indices = @transform_4, window_bounds = array<i64: 4, 32>}, {transform_indices = @transform_5, window_bounds = array<i64: 8, 4, 32>}, {pipeline_mode = #tpu.pipeline_mode<synchronous>, transform_indices = @transform_6, window_bounds = array<i64: 4, 32>}]} {
    %c0_i32 = arith.constant 0 : i32
    %0 = arith.cmpi eq, %arg0, %c0_i32 : i32
    %1 = arith.extui %0 : i1 to i32
    %c0_i32_0 = arith.constant 0 : i32
    %2 = arith.cmpi ne, %1, %c0_i32_0 : i32
    scf.if %2 {
      %c0_83 = arith.constant 0 : index
      %c0_84 = arith.constant 0 : index
      %403 = vector.load %arg5[%c0_83, %c0_84] : memref<4x32xf32, #tpu.memory_space<vmem>>, vector<4x32xf32>
      %c0_85 = arith.constant 0 : index
      %c0_86 = arith.constant 0 : index
      %404 = vector.load %arg7[%c0_85, %c0_86] : memref<4x32xf32, #tpu.memory_space<vmem>>, vector<4x32xf32>
      tpu.vector_store %arg7[%c0_85, %c0_86], %403 {strides = array<i32>} : memref<4x32xf32, #tpu.memory_space<vmem>>, vector<4x32xf32>,
    } else {
    }
    %c0 = arith.constant 0 : index
    %c0_1 = arith.constant 0 : index
    %3 = vector.load %arg3[%c0, %c0_1] : memref<32x96xf32, #tpu.memory_space<vmem>>, vector<32x96xf32>
    %c0_2 = arith.constant 0 : index
    %c0_3 = arith.constant 0 : index
    %4 = vector.load %arg2[%c0_2, %c0_3] : memref<4x1xi32, #tpu.memory_space<vmem>>, vector<4x1xi32>
    %c0_4 = arith.constant 0 : index
    %c0_5 = arith.constant 0 : index
    %5 = vector.load %arg4[%c0_4, %c0_5] : memref<1x32xf32, #tpu.memory_space<vmem>>, vector<1x32xf32>
    %6 = vector.shape_cast %5 : vector<1x32xf32> to vector<1x32xf32>
    %7 = vector.broadcast %6 : vector<1x32xf32> to vector<4x32xf32>
    %c8_i32 = arith.constant 8 : i32
    %8 = arith.muli %arg0, %c8_i32 : i32
    %c0_6 = arith.constant 0 : index
    %c0_7 = arith.constant 0 : index
    %9 = vector.load %arg7[%c0_6, %c0_7] : memref<4x32xf32, #tpu.memory_space<vmem>>, vector<4x32xf32>
    %c0_i32_8 = arith.constant 0 : i32
    %10 = arith.index_cast %c0_i32_8 : i32 to index
    %c0_9 = arith.constant 0 : index
    %c0_10 = arith.constant 0 : index
    %11 = vector.load %arg1[%10, %c0_9, %c0_10] : memref<8x4x96xf32, #tpu.memory_space<vmem>>, vector<1x4x96xf32>
    %12 = vector.shape_cast %11 : vector<1x4x96xf32> to vector<4x96xf32>
    %cst = arith.constant dense<0.000000e+00> : vector<4x96xf32>
    %13 = tpu.matmul %9, %3, %cst {dimension_numbers = #tpu.dot_dimension_numbers<[1], [0], [0], [1], [0, 0, 1, 1], [], []>} : vector<4x32xf32>, vector<32x96xf32>, vector<4x96xf32> -> vector<4x96xf32>
    %14 = vector.extract_strided_slice %12 {offsets = [0, 0], sizes = [4, 32], strides = [1, 1]} : vector<4x96xf32> to vector<4x32xf32>
    %15 = vector.extract_strided_slice %13 {offsets = [0, 0], sizes = [4, 32], strides = [1, 1]} : vector<4x96xf32> to vector<4x32xf32>
    %16 = arith.addf %14, %15 : vector<4x32xf32>
    %17 = arith.negf %16 : vector<4x32xf32>
    %18 = math.exp %17 : vector<4x32xf32>
    %cst_11 = arith.constant 1.000000e+00 : f32
    %19 = vector.broadcast %cst_11 : f32 to vector<4x32xf32>
    %20 = arith.addf %19, %18 : vector<4x32xf32>
    %21 = arith.divf %19, %20 : vector<4x32xf32>
    %22 = vector.extract_strided_slice %12 {offsets = [0, 32], sizes = [4, 32], strides = [1, 1]} : vector<4x96xf32> to vector<4x32xf32>
    %23 = vector.extract_strided_slice %13 {offsets = [0, 32], sizes = [4, 32], strides = [1, 1]} : vector<4x96xf32> to vector<4x32xf32>
    %24 = arith.addf %22, %23 : vector<4x32xf32>
    %25 = arith.negf %24 : vector<4x32xf32>
    %26 = math.exp %25 : vector<4x32xf32>
    %cst_12 = arith.constant 1.000000e+00 : f32
    %27 = vector.broadcast %cst_12 : f32 to vector<4x32xf32>
    %28 = arith.addf %27, %26 : vector<4x32xf32>
    %29 = arith.divf %27, %28 : vector<4x32xf32>
    %30 = vector.extract_strided_slice %12 {offsets = [0, 64], sizes = [4, 32], strides = [1, 1]} : vector<4x96xf32> to vector<4x32xf32>
    %31 = vector.extract_strided_slice %13 {offsets = [0, 64], sizes = [4, 32], strides = [1, 1]} : vector<4x96xf32> to vector<4x32xf32>
    %32 = arith.addf %31, %7 : vector<4x32xf32>
    %33 = arith.mulf %21, %32 : vector<4x32xf32>
    %34 = arith.addf %30, %33 : vector<4x32xf32>
    %35 = math.tanh %34 : vector<4x32xf32>
    %cst_13 = arith.constant 1.000000e+00 : f32
    %36 = vector.broadcast %cst_13 : f32 to vector<4x32xf32>
    %37 = arith.subf %36, %29 : vector<4x32xf32>
    %38 = arith.mulf %37, %35 : vector<4x32xf32>
    %39 = arith.mulf %29, %9 : vector<4x32xf32>
    %40 = arith.addf %38, %39 : vector<4x32xf32>
    %41 = arith.addi %8, %c0_i32_8 : i32
    %42 = vector.broadcast %41 : i32 to vector<4x1xi32>
    %43 = arith.cmpi slt, %42, %4 : vector<4x1xi32>
    %44 = arith.extui %43 : vector<4x1xi1> to vector<4x1xi32>
    %45 = arith.sitofp %44 : vector<4x1xi32> to vector<4x1xf32>
    %46 = vector.broadcast %45 : vector<4x1xf32> to vector<4x32xf32>
    %47 = arith.mulf %46, %40 : vector<4x32xf32>
    %48 = arith.index_cast %c0_i32_8 : i32 to index
    %c0_14 = arith.constant 0 : index
    %c0_15 = arith.constant 0 : index
    %49 = vector.load %arg6[%48, %c0_14, %c0_15] : memref<8x4x32xf32, #tpu.memory_space<vmem>>, vector<1x4x32xf32>
    %50 = vector.shape_cast %49 : vector<1x4x32xf32> to vector<4x32xf32>
    %51 = vector.shape_cast %47 : vector<4x32xf32> to vector<1x4x32xf32>
    tpu.vector_store %arg6[%48, %c0_14, %c0_15], %51 {strides = array<i32>} : memref<8x4x32xf32, #tpu.memory_space<vmem>>, vector<1x4x32xf32>,
    %52 = vector.broadcast %45 : vector<4x1xf32> to vector<4x32xf32>
    %53 = arith.mulf %52, %40 : vector<4x32xf32>
    %cst_16 = arith.constant 1.000000e+00 : f32
    %54 = vector.broadcast %cst_16 : f32 to vector<4x1xf32>
    %55 = arith.subf %54, %45 : vector<4x1xf32>
    %56 = vector.broadcast %55 : vector<4x1xf32> to vector<4x32xf32>
    %57 = arith.mulf %56, %9 : vector<4x32xf32>
    %58 = arith.addf %53, %57 : vector<4x32xf32>
    %c1_i32 = arith.constant 1 : i32
    %59 = arith.index_cast %c1_i32 : i32 to index
    %c0_17 = arith.constant 0 : index
    %c0_18 = arith.constant 0 : index
    %60 = vector.load %arg1[%59, %c0_17, %c0_18] : memref<8x4x96xf32, #tpu.memory_space<vmem>>, vector<1x4x96xf32>
    %61 = vector.shape_cast %60 : vector<1x4x96xf32> to vector<4x96xf32>
    %cst_19 = arith.constant dense<0.000000e+00> : vector<4x96xf32>
    %62 = tpu.matmul %58, %3, %cst_19 {dimension_numbers = #tpu.dot_dimension_numbers<[1], [0], [0], [1], [0, 0, 1, 1], [], []>} : vector<4x32xf32>, vector<32x96xf32>, vector<4x96xf32> -> vector<4x96xf32>
    %63 = vector.extract_strided_slice %61 {offsets = [0, 0], sizes = [4, 32], strides = [1, 1]} : vector<4x96xf32> to vector<4x32xf32>
    %64 = vector.extract_strided_slice %62 {offsets = [0, 0], sizes = [4, 32], strides = [1, 1]} : vector<4x96xf32> to vector<4x32xf32>
    %65 = arith.addf %63, %64 : vector<4x32xf32>
    %66 = arith.negf %65 : vector<4x32xf32>
    %67 = math.exp %66 : vector<4x32xf32>
    %cst_20 = arith.constant 1.000000e+00 : f32
    %68 = vector.broadcast %cst_20 : f32 to vector<4x32xf32>
    %69 = arith.addf %68, %67 : vector<4x32xf32>
    %70 = arith.divf %68, %69 : vector<4x32xf32>
    %71 = vector.extract_strided_slice %61 {offsets = [0, 32], sizes = [4, 32], strides = [1, 1]} : vector<4x96xf32> to vector<4x32xf32>
    %72 = vector.extract_strided_slice %62 {offsets = [0, 32], sizes = [4, 32], strides = [1, 1]} : vector<4x96xf32> to vector<4x32xf32>
    %73 = arith.addf %71, %72 : vector<4x32xf32>
    %74 = arith.negf %73 : vector<4x32xf32>
    %75 = math.exp %74 : vector<4x32xf32>
    %cst_21 = arith.constant 1.000000e+00 : f32
    %76 = vector.broadcast %cst_21 : f32 to vector<4x32xf32>
    %77 = arith.addf %76, %75 : vector<4x32xf32>
    %78 = arith.divf %76, %77 : vector<4x32xf32>
    %79 = vector.extract_strided_slice %61 {offsets = [0, 64], sizes = [4, 32], strides = [1, 1]} : vector<4x96xf32> to vector<4x32xf32>
    %80 = vector.extract_strided_slice %62 {offsets = [0, 64], sizes = [4, 32], strides = [1, 1]} : vector<4x96xf32> to vector<4x32xf32>
    %81 = arith.addf %80, %7 : vector<4x32xf32>
    %82 = arith.mulf %70, %81 : vector<4x32xf32>
    %83 = arith.addf %79, %82 : vector<4x32xf32>
    %84 = math.tanh %83 : vector<4x32xf32>
    %cst_22 = arith.constant 1.000000e+00 : f32
    %85 = vector.broadcast %cst_22 : f32 to vector<4x32xf32>
    %86 = arith.subf %85, %78 : vector<4x32xf32>
    %87 = arith.mulf %86, %84 : vector<4x32xf32>
    %88 = arith.mulf %78, %58 : vector<4x32xf32>
    %89 = arith.addf %87, %88 : vector<4x32xf32>
    %90 = arith.addi %8, %c1_i32 : i32
    %91 = vector.broadcast %90 : i32 to vector<4x1xi32>
    %92 = arith.cmpi slt, %91, %4 : vector<4x1xi32>
    %93 = arith.extui %92 : vector<4x1xi1> to vector<4x1xi32>
    %94 = arith.sitofp %93 : vector<4x1xi32> to vector<4x1xf32>
    %95 = vector.broadcast %94 : vector<4x1xf32> to vector<4x32xf32>
    %96 = arith.mulf %95, %89 : vector<4x32xf32>
    %97 = arith.index_cast %c1_i32 : i32 to index
    %c0_23 = arith.constant 0 : index
    %c0_24 = arith.constant 0 : index
    %98 = vector.load %arg6[%97, %c0_23, %c0_24] : memref<8x4x32xf32, #tpu.memory_space<vmem>>, vector<1x4x32xf32>
    %99 = vector.shape_cast %98 : vector<1x4x32xf32> to vector<4x32xf32>
    %100 = vector.shape_cast %96 : vector<4x32xf32> to vector<1x4x32xf32>
    tpu.vector_store %arg6[%97, %c0_23, %c0_24], %100 {strides = array<i32>} : memref<8x4x32xf32, #tpu.memory_space<vmem>>, vector<1x4x32xf32>,
    %101 = vector.broadcast %94 : vector<4x1xf32> to vector<4x32xf32>
    %102 = arith.mulf %101, %89 : vector<4x32xf32>
    %cst_25 = arith.constant 1.000000e+00 : f32
    %103 = vector.broadcast %cst_25 : f32 to vector<4x1xf32>
    %104 = arith.subf %103, %94 : vector<4x1xf32>
    %105 = vector.broadcast %104 : vector<4x1xf32> to vector<4x32xf32>
    %106 = arith.mulf %105, %58 : vector<4x32xf32>
    %107 = arith.addf %102, %106 : vector<4x32xf32>
    %c2_i32 = arith.constant 2 : i32
    %108 = arith.index_cast %c2_i32 : i32 to index
    %c0_26 = arith.constant 0 : index
    %c0_27 = arith.constant 0 : index
    %109 = vector.load %arg1[%108, %c0_26, %c0_27] : memref<8x4x96xf32, #tpu.memory_space<vmem>>, vector<1x4x96xf32>
    %110 = vector.shape_cast %109 : vector<1x4x96xf32> to vector<4x96xf32>
    %cst_28 = arith.constant dense<0.000000e+00> : vector<4x96xf32>
    %111 = tpu.matmul %107, %3, %cst_28 {dimension_numbers = #tpu.dot_dimension_numbers<[1], [0], [0], [1], [0, 0, 1, 1], [], []>} : vector<4x32xf32>, vector<32x96xf32>, vector<4x96xf32> -> vector<4x96xf32>
    %112 = vector.extract_strided_slice %110 {offsets = [0, 0], sizes = [4, 32], strides = [1, 1]} : vector<4x96xf32> to vector<4x32xf32>
    %113 = vector.extract_strided_slice %111 {offsets = [0, 0], sizes = [4, 32], strides = [1, 1]} : vector<4x96xf32> to vector<4x32xf32>
    %114 = arith.addf %112, %113 : vector<4x32xf32>
    %115 = arith.negf %114 : vector<4x32xf32>
    %116 = math.exp %115 : vector<4x32xf32>
    %cst_29 = arith.constant 1.000000e+00 : f32
    %117 = vector.broadcast %cst_29 : f32 to vector<4x32xf32>
    %118 = arith.addf %117, %116 : vector<4x32xf32>
    %119 = arith.divf %117, %118 : vector<4x32xf32>
    %120 = vector.extract_strided_slice %110 {offsets = [0, 32], sizes = [4, 32], strides = [1, 1]} : vector<4x96xf32> to vector<4x32xf32>
    %121 = vector.extract_strided_slice %111 {offsets = [0, 32], sizes = [4, 32], strides = [1, 1]} : vector<4x96xf32> to vector<4x32xf32>
    %122 = arith.addf %120, %121 : vector<4x32xf32>
    %123 = arith.negf %122 : vector<4x32xf32>
    %124 = math.exp %123 : vector<4x32xf32>
    %cst_30 = arith.constant 1.000000e+00 : f32
    %125 = vector.broadcast %cst_30 : f32 to vector<4x32xf32>
    %126 = arith.addf %125, %124 : vector<4x32xf32>
    %127 = arith.divf %125, %126 : vector<4x32xf32>
    %128 = vector.extract_strided_slice %110 {offsets = [0, 64], sizes = [4, 32], strides = [1, 1]} : vector<4x96xf32> to vector<4x32xf32>
    %129 = vector.extract_strided_slice %111 {offsets = [0, 64], sizes = [4, 32], strides = [1, 1]} : vector<4x96xf32> to vector<4x32xf32>
    %130 = arith.addf %129, %7 : vector<4x32xf32>
    %131 = arith.mulf %119, %130 : vector<4x32xf32>
    %132 = arith.addf %128, %131 : vector<4x32xf32>
    %133 = math.tanh %132 : vector<4x32xf32>
    %cst_31 = arith.constant 1.000000e+00 : f32
    %134 = vector.broadcast %cst_31 : f32 to vector<4x32xf32>
    %135 = arith.subf %134, %127 : vector<4x32xf32>
    %136 = arith.mulf %135, %133 : vector<4x32xf32>
    %137 = arith.mulf %127, %107 : vector<4x32xf32>
    %138 = arith.addf %136, %137 : vector<4x32xf32>
    %139 = arith.addi %8, %c2_i32 : i32
    %140 = vector.broadcast %139 : i32 to vector<4x1xi32>
    %141 = arith.cmpi slt, %140, %4 : vector<4x1xi32>
    %142 = arith.extui %141 : vector<4x1xi1> to vector<4x1xi32>
    %143 = arith.sitofp %142 : vector<4x1xi32> to vector<4x1xf32>
    %144 = vector.broadcast %143 : vector<4x1xf32> to vector<4x32xf32>
    %145 = arith.mulf %144, %138 : vector<4x32xf32>
    %146 = arith.index_cast %c2_i32 : i32 to index
    %c0_32 = arith.constant 0 : index
    %c0_33 = arith.constant 0 : index
    %147 = vector.load %arg6[%146, %c0_32, %c0_33] : memref<8x4x32xf32, #tpu.memory_space<vmem>>, vector<1x4x32xf32>
    %148 = vector.shape_cast %147 : vector<1x4x32xf32> to vector<4x32xf32>
    %149 = vector.shape_cast %145 : vector<4x32xf32> to vector<1x4x32xf32>
    tpu.vector_store %arg6[%146, %c0_32, %c0_33], %149 {strides = array<i32>} : memref<8x4x32xf32, #tpu.memory_space<vmem>>, vector<1x4x32xf32>,
    %150 = vector.broadcast %143 : vector<4x1xf32> to vector<4x32xf32>
    %151 = arith.mulf %150, %138 : vector<4x32xf32>
    %cst_34 = arith.constant 1.000000e+00 : f32
    %152 = vector.broadcast %cst_34 : f32 to vector<4x1xf32>
    %153 = arith.subf %152, %143 : vector<4x1xf32>
    %154 = vector.broadcast %153 : vector<4x1xf32> to vector<4x32xf32>
    %155 = arith.mulf %154, %107 : vector<4x32xf32>
    %156 = arith.addf %151, %155 : vector<4x32xf32>
    %c3_i32 = arith.constant 3 : i32
    %157 = arith.index_cast %c3_i32 : i32 to index
    %c0_35 = arith.constant 0 : index
    %c0_36 = arith.constant 0 : index
    %158 = vector.load %arg1[%157, %c0_35, %c0_36] : memref<8x4x96xf32, #tpu.memory_space<vmem>>, vector<1x4x96xf32>
    %159 = vector.shape_cast %158 : vector<1x4x96xf32> to vector<4x96xf32>
    %cst_37 = arith.constant dense<0.000000e+00> : vector<4x96xf32>
    %160 = tpu.matmul %156, %3, %cst_37 {dimension_numbers = #tpu.dot_dimension_numbers<[1], [0], [0], [1], [0, 0, 1, 1], [], []>} : vector<4x32xf32>, vector<32x96xf32>, vector<4x96xf32> -> vector<4x96xf32>
    %161 = vector.extract_strided_slice %159 {offsets = [0, 0], sizes = [4, 32], strides = [1, 1]} : vector<4x96xf32> to vector<4x32xf32>
    %162 = vector.extract_strided_slice %160 {offsets = [0, 0], sizes = [4, 32], strides = [1, 1]} : vector<4x96xf32> to vector<4x32xf32>
    %163 = arith.addf %161, %162 : vector<4x32xf32>
    %164 = arith.negf %163 : vector<4x32xf32>
    %165 = math.exp %164 : vector<4x32xf32>
    %cst_38 = arith.constant 1.000000e+00 : f32
    %166 = vector.broadcast %cst_38 : f32 to vector<4x32xf32>
    %167 = arith.addf %166, %165 : vector<4x32xf32>
    %168 = arith.divf %166, %167 : vector<4x32xf32>
    %169 = vector.extract_strided_slice %159 {offsets = [0, 32], sizes = [4, 32], strides = [1, 1]} : vector<4x96xf32> to vector<4x32xf32>
    %170 = vector.extract_strided_slice %160 {offsets = [0, 32], sizes = [4, 32], strides = [1, 1]} : vector<4x96xf32> to vector<4x32xf32>
    %171 = arith.addf %169, %170 : vector<4x32xf32>
    %172 = arith.negf %171 : vector<4x32xf32>
    %173 = math.exp %172 : vector<4x32xf32>
    %cst_39 = arith.constant 1.000000e+00 : f32
    %174 = vector.broadcast %cst_39 : f32 to vector<4x32xf32>
    %175 = arith.addf %174, %173 : vector<4x32xf32>
    %176 = arith.divf %174, %175 : vector<4x32xf32>
    %177 = vector.extract_strided_slice %159 {offsets = [0, 64], sizes = [4, 32], strides = [1, 1]} : vector<4x96xf32> to vector<4x32xf32>
    %178 = vector.extract_strided_slice %160 {offsets = [0, 64], sizes = [4, 32], strides = [1, 1]} : vector<4x96xf32> to vector<4x32xf32>
    %179 = arith.addf %178, %7 : vector<4x32xf32>
    %180 = arith.mulf %168, %179 : vector<4x32xf32>
    %181 = arith.addf %177, %180 : vector<4x32xf32>
    %182 = math.tanh %181 : vector<4x32xf32>
    %cst_40 = arith.constant 1.000000e+00 : f32
    %183 = vector.broadcast %cst_40 : f32 to vector<4x32xf32>
    %184 = arith.subf %183, %176 : vector<4x32xf32>
    %185 = arith.mulf %184, %182 : vector<4x32xf32>
    %186 = arith.mulf %176, %156 : vector<4x32xf32>
    %187 = arith.addf %185, %186 : vector<4x32xf32>
    %188 = arith.addi %8, %c3_i32 : i32
    %189 = vector.broadcast %188 : i32 to vector<4x1xi32>
    %190 = arith.cmpi slt, %189, %4 : vector<4x1xi32>
    %191 = arith.extui %190 : vector<4x1xi1> to vector<4x1xi32>
    %192 = arith.sitofp %191 : vector<4x1xi32> to vector<4x1xf32>
    %193 = vector.broadcast %192 : vector<4x1xf32> to vector<4x32xf32>
    %194 = arith.mulf %193, %187 : vector<4x32xf32>
    %195 = arith.index_cast %c3_i32 : i32 to index
    %c0_41 = arith.constant 0 : index
    %c0_42 = arith.constant 0 : index
    %196 = vector.load %arg6[%195, %c0_41, %c0_42] : memref<8x4x32xf32, #tpu.memory_space<vmem>>, vector<1x4x32xf32>
    %197 = vector.shape_cast %196 : vector<1x4x32xf32> to vector<4x32xf32>
    %198 = vector.shape_cast %194 : vector<4x32xf32> to vector<1x4x32xf32>
    tpu.vector_store %arg6[%195, %c0_41, %c0_42], %198 {strides = array<i32>} : memref<8x4x32xf32, #tpu.memory_space<vmem>>, vector<1x4x32xf32>,
    %199 = vector.broadcast %192 : vector<4x1xf32> to vector<4x32xf32>
    %200 = arith.mulf %199, %187 : vector<4x32xf32>
    %cst_43 = arith.constant 1.000000e+00 : f32
    %201 = vector.broadcast %cst_43 : f32 to vector<4x1xf32>
    %202 = arith.subf %201, %192 : vector<4x1xf32>
    %203 = vector.broadcast %202 : vector<4x1xf32> to vector<4x32xf32>
    %204 = arith.mulf %203, %156 : vector<4x32xf32>
    %205 = arith.addf %200, %204 : vector<4x32xf32>
    %c4_i32 = arith.constant 4 : i32
    %206 = arith.index_cast %c4_i32 : i32 to index
    %c0_44 = arith.constant 0 : index
    %c0_45 = arith.constant 0 : index
    %207 = vector.load %arg1[%206, %c0_44, %c0_45] : memref<8x4x96xf32, #tpu.memory_space<vmem>>, vector<1x4x96xf32>
    %208 = vector.shape_cast %207 : vector<1x4x96xf32> to vector<4x96xf32>
    %cst_46 = arith.constant dense<0.000000e+00> : vector<4x96xf32>
    %209 = tpu.matmul %205, %3, %cst_46 {dimension_numbers = #tpu.dot_dimension_numbers<[1], [0], [0], [1], [0, 0, 1, 1], [], []>} : vector<4x32xf32>, vector<32x96xf32>, vector<4x96xf32> -> vector<4x96xf32>
    %210 = vector.extract_strided_slice %208 {offsets = [0, 0], sizes = [4, 32], strides = [1, 1]} : vector<4x96xf32> to vector<4x32xf32>
    %211 = vector.extract_strided_slice %209 {offsets = [0, 0], sizes = [4, 32], strides = [1, 1]} : vector<4x96xf32> to vector<4x32xf32>
    %212 = arith.addf %210, %211 : vector<4x32xf32>
    %213 = arith.negf %212 : vector<4x32xf32>
    %214 = math.exp %213 : vector<4x32xf32>
    %cst_47 = arith.constant 1.000000e+00 : f32
    %215 = vector.broadcast %cst_47 : f32 to vector<4x32xf32>
    %216 = arith.addf %215, %214 : vector<4x32xf32>
    %217 = arith.divf %215, %216 : vector<4x32xf32>
    %218 = vector.extract_strided_slice %208 {offsets = [0, 32], sizes = [4, 32], strides = [1, 1]} : vector<4x96xf32> to vector<4x32xf32>
    %219 = vector.extract_strided_slice %209 {offsets = [0, 32], sizes = [4, 32], strides = [1, 1]} : vector<4x96xf32> to vector<4x32xf32>
    %220 = arith.addf %218, %219 : vector<4x32xf32>
    %221 = arith.negf %220 : vector<4x32xf32>
    %222 = math.exp %221 : vector<4x32xf32>
    %cst_48 = arith.constant 1.000000e+00 : f32
    %223 = vector.broadcast %cst_48 : f32 to vector<4x32xf32>
    %224 = arith.addf %223, %222 : vector<4x32xf32>
    %225 = arith.divf %223, %224 : vector<4x32xf32>
    %226 = vector.extract_strided_slice %208 {offsets = [0, 64], sizes = [4, 32], strides = [1, 1]} : vector<4x96xf32> to vector<4x32xf32>
    %227 = vector.extract_strided_slice %209 {offsets = [0, 64], sizes = [4, 32], strides = [1, 1]} : vector<4x96xf32> to vector<4x32xf32>
    %228 = arith.addf %227, %7 : vector<4x32xf32>
    %229 = arith.mulf %217, %228 : vector<4x32xf32>
    %230 = arith.addf %226, %229 : vector<4x32xf32>
    %231 = math.tanh %230 : vector<4x32xf32>
    %cst_49 = arith.constant 1.000000e+00 : f32
    %232 = vector.broadcast %cst_49 : f32 to vector<4x32xf32>
    %233 = arith.subf %232, %225 : vector<4x32xf32>
    %234 = arith.mulf %233, %231 : vector<4x32xf32>
    %235 = arith.mulf %225, %205 : vector<4x32xf32>
    %236 = arith.addf %234, %235 : vector<4x32xf32>
    %237 = arith.addi %8, %c4_i32 : i32
    %238 = vector.broadcast %237 : i32 to vector<4x1xi32>
    %239 = arith.cmpi slt, %238, %4 : vector<4x1xi32>
    %240 = arith.extui %239 : vector<4x1xi1> to vector<4x1xi32>
    %241 = arith.sitofp %240 : vector<4x1xi32> to vector<4x1xf32>
    %242 = vector.broadcast %241 : vector<4x1xf32> to vector<4x32xf32>
    %243 = arith.mulf %242, %236 : vector<4x32xf32>
    %244 = arith.index_cast %c4_i32 : i32 to index
    %c0_50 = arith.constant 0 : index
    %c0_51 = arith.constant 0 : index
    %245 = vector.load %arg6[%244, %c0_50, %c0_51] : memref<8x4x32xf32, #tpu.memory_space<vmem>>, vector<1x4x32xf32>
    %246 = vector.shape_cast %245 : vector<1x4x32xf32> to vector<4x32xf32>
    %247 = vector.shape_cast %243 : vector<4x32xf32> to vector<1x4x32xf32>
    tpu.vector_store %arg6[%244, %c0_50, %c0_51], %247 {strides = array<i32>} : memref<8x4x32xf32, #tpu.memory_space<vmem>>, vector<1x4x32xf32>,
    %248 = vector.broadcast %241 : vector<4x1xf32> to vector<4x32xf32>
    %249 = arith.mulf %248, %236 : vector<4x32xf32>
    %cst_52 = arith.constant 1.000000e+00 : f32
    %250 = vector.broadcast %cst_52 : f32 to vector<4x1xf32>
    %251 = arith.subf %250, %241 : vector<4x1xf32>
    %252 = vector.broadcast %251 : vector<4x1xf32> to vector<4x32xf32>
    %253 = arith.mulf %252, %205 : vector<4x32xf32>
    %254 = arith.addf %249, %253 : vector<4x32xf32>
    %c5_i32 = arith.constant 5 : i32
    %255 = arith.index_cast %c5_i32 : i32 to index
    %c0_53 = arith.constant 0 : index
    %c0_54 = arith.constant 0 : index
    %256 = vector.load %arg1[%255, %c0_53, %c0_54] : memref<8x4x96xf32, #tpu.memory_space<vmem>>, vector<1x4x96xf32>
    %257 = vector.shape_cast %256 : vector<1x4x96xf32> to vector<4x96xf32>
    %cst_55 = arith.constant dense<0.000000e+00> : vector<4x96xf32>
    %258 = tpu.matmul %254, %3, %cst_55 {dimension_numbers = #tpu.dot_dimension_numbers<[1], [0], [0], [1], [0, 0, 1, 1], [], []>} : vector<4x32xf32>, vector<32x96xf32>, vector<4x96xf32> -> vector<4x96xf32>
    %259 = vector.extract_strided_slice %257 {offsets = [0, 0], sizes = [4, 32], strides = [1, 1]} : vector<4x96xf32> to vector<4x32xf32>
    %260 = vector.extract_strided_slice %258 {offsets = [0, 0], sizes = [4, 32], strides = [1, 1]} : vector<4x96xf32> to vector<4x32xf32>
    %261 = arith.addf %259, %260 : vector<4x32xf32>
    %262 = arith.negf %261 : vector<4x32xf32>
    %263 = math.exp %262 : vector<4x32xf32>
    %cst_56 = arith.constant 1.000000e+00 : f32
    %264 = vector.broadcast %cst_56 : f32 to vector<4x32xf32>
    %265 = arith.addf %264, %263 : vector<4x32xf32>
    %266 = arith.divf %264, %265 : vector<4x32xf32>
    %267 = vector.extract_strided_slice %257 {offsets = [0, 32], sizes = [4, 32], strides = [1, 1]} : vector<4x96xf32> to vector<4x32xf32>
    %268 = vector.extract_strided_slice %258 {offsets = [0, 32], sizes = [4, 32], strides = [1, 1]} : vector<4x96xf32> to vector<4x32xf32>
    %269 = arith.addf %267, %268 : vector<4x32xf32>
    %270 = arith.negf %269 : vector<4x32xf32>
    %271 = math.exp %270 : vector<4x32xf32>
    %cst_57 = arith.constant 1.000000e+00 : f32
    %272 = vector.broadcast %cst_57 : f32 to vector<4x32xf32>
    %273 = arith.addf %272, %271 : vector<4x32xf32>
    %274 = arith.divf %272, %273 : vector<4x32xf32>
    %275 = vector.extract_strided_slice %257 {offsets = [0, 64], sizes = [4, 32], strides = [1, 1]} : vector<4x96xf32> to vector<4x32xf32>
    %276 = vector.extract_strided_slice %258 {offsets = [0, 64], sizes = [4, 32], strides = [1, 1]} : vector<4x96xf32> to vector<4x32xf32>
    %277 = arith.addf %276, %7 : vector<4x32xf32>
    %278 = arith.mulf %266, %277 : vector<4x32xf32>
    %279 = arith.addf %275, %278 : vector<4x32xf32>
    %280 = math.tanh %279 : vector<4x32xf32>
    %cst_58 = arith.constant 1.000000e+00 : f32
    %281 = vector.broadcast %cst_58 : f32 to vector<4x32xf32>
    %282 = arith.subf %281, %274 : vector<4x32xf32>
    %283 = arith.mulf %282, %280 : vector<4x32xf32>
    %284 = arith.mulf %274, %254 : vector<4x32xf32>
    %285 = arith.addf %283, %284 : vector<4x32xf32>
    %286 = arith.addi %8, %c5_i32 : i32
    %287 = vector.broadcast %286 : i32 to vector<4x1xi32>
    %288 = arith.cmpi slt, %287, %4 : vector<4x1xi32>
    %289 = arith.extui %288 : vector<4x1xi1> to vector<4x1xi32>
    %290 = arith.sitofp %289 : vector<4x1xi32> to vector<4x1xf32>
    %291 = vector.broadcast %290 : vector<4x1xf32> to vector<4x32xf32>
    %292 = arith.mulf %291, %285 : vector<4x32xf32>
    %293 = arith.index_cast %c5_i32 : i32 to index
    %c0_59 = arith.constant 0 : index
    %c0_60 = arith.constant 0 : index
    %294 = vector.load %arg6[%293, %c0_59, %c0_60] : memref<8x4x32xf32, #tpu.memory_space<vmem>>, vector<1x4x32xf32>
    %295 = vector.shape_cast %294 : vector<1x4x32xf32> to vector<4x32xf32>
    %296 = vector.shape_cast %292 : vector<4x32xf32> to vector<1x4x32xf32>
    tpu.vector_store %arg6[%293, %c0_59, %c0_60], %296 {strides = array<i32>} : memref<8x4x32xf32, #tpu.memory_space<vmem>>, vector<1x4x32xf32>,
    %297 = vector.broadcast %290 : vector<4x1xf32> to vector<4x32xf32>
    %298 = arith.mulf %297, %285 : vector<4x32xf32>
    %cst_61 = arith.constant 1.000000e+00 : f32
    %299 = vector.broadcast %cst_61 : f32 to vector<4x1xf32>
    %300 = arith.subf %299, %290 : vector<4x1xf32>
    %301 = vector.broadcast %300 : vector<4x1xf32> to vector<4x32xf32>
    %302 = arith.mulf %301, %254 : vector<4x32xf32>
    %303 = arith.addf %298, %302 : vector<4x32xf32>
    %c6_i32 = arith.constant 6 : i32
    %304 = arith.index_cast %c6_i32 : i32 to index
    %c0_62 = arith.constant 0 : index
    %c0_63 = arith.constant 0 : index
    %305 = vector.load %arg1[%304, %c0_62, %c0_63] : memref<8x4x96xf32, #tpu.memory_space<vmem>>, vector<1x4x96xf32>
    %306 = vector.shape_cast %305 : vector<1x4x96xf32> to vector<4x96xf32>
    %cst_64 = arith.constant dense<0.000000e+00> : vector<4x96xf32>
    %307 = tpu.matmul %303, %3, %cst_64 {dimension_numbers = #tpu.dot_dimension_numbers<[1], [0], [0], [1], [0, 0, 1, 1], [], []>} : vector<4x32xf32>, vector<32x96xf32>, vector<4x96xf32> -> vector<4x96xf32>
    %308 = vector.extract_strided_slice %306 {offsets = [0, 0], sizes = [4, 32], strides = [1, 1]} : vector<4x96xf32> to vector<4x32xf32>
    %309 = vector.extract_strided_slice %307 {offsets = [0, 0], sizes = [4, 32], strides = [1, 1]} : vector<4x96xf32> to vector<4x32xf32>
    %310 = arith.addf %308, %309 : vector<4x32xf32>
    %311 = arith.negf %310 : vector<4x32xf32>
    %312 = math.exp %311 : vector<4x32xf32>
    %cst_65 = arith.constant 1.000000e+00 : f32
    %313 = vector.broadcast %cst_65 : f32 to vector<4x32xf32>
    %314 = arith.addf %313, %312 : vector<4x32xf32>
    %315 = arith.divf %313, %314 : vector<4x32xf32>
    %316 = vector.extract_strided_slice %306 {offsets = [0, 32], sizes = [4, 32], strides = [1, 1]} : vector<4x96xf32> to vector<4x32xf32>
    %317 = vector.extract_strided_slice %307 {offsets = [0, 32], sizes = [4, 32], strides = [1, 1]} : vector<4x96xf32> to vector<4x32xf32>
    %318 = arith.addf %316, %317 : vector<4x32xf32>
    %319 = arith.negf %318 : vector<4x32xf32>
    %320 = math.exp %319 : vector<4x32xf32>
    %cst_66 = arith.constant 1.000000e+00 : f32
    %321 = vector.broadcast %cst_66 : f32 to vector<4x32xf32>
    %322 = arith.addf %321, %320 : vector<4x32xf32>
    %323 = arith.divf %321, %322 : vector<4x32xf32>
    %324 = vector.extract_strided_slice %306 {offsets = [0, 64], sizes = [4, 32], strides = [1, 1]} : vector<4x96xf32> to vector<4x32xf32>
    %325 = vector.extract_strided_slice %307 {offsets = [0, 64], sizes = [4, 32], strides = [1, 1]} : vector<4x96xf32> to vector<4x32xf32>
    %326 = arith.addf %325, %7 : vector<4x32xf32>
    %327 = arith.mulf %315, %326 : vector<4x32xf32>
    %328 = arith.addf %324, %327 : vector<4x32xf32>
    %329 = math.tanh %328 : vector<4x32xf32>
    %cst_67 = arith.constant 1.000000e+00 : f32
    %330 = vector.broadcast %cst_67 : f32 to vector<4x32xf32>
    %331 = arith.subf %330, %323 : vector<4x32xf32>
    %332 = arith.mulf %331, %329 : vector<4x32xf32>
    %333 = arith.mulf %323, %303 : vector<4x32xf32>
    %334 = arith.addf %332, %333 : vector<4x32xf32>
    %335 = arith.addi %8, %c6_i32 : i32
    %336 = vector.broadcast %335 : i32 to vector<4x1xi32>
    %337 = arith.cmpi slt, %336, %4 : vector<4x1xi32>
    %338 = arith.extui %337 : vector<4x1xi1> to vector<4x1xi32>
    %339 = arith.sitofp %338 : vector<4x1xi32> to vector<4x1xf32>
    %340 = vector.broadcast %339 : vector<4x1xf32> to vector<4x32xf32>
    %341 = arith.mulf %340, %334 : vector<4x32xf32>
    %342 = arith.index_cast %c6_i32 : i32 to index
    %c0_68 = arith.constant 0 : index
    %c0_69 = arith.constant 0 : index
    %343 = vector.load %arg6[%342, %c0_68, %c0_69] : memref<8x4x32xf32, #tpu.memory_space<vmem>>, vector<1x4x32xf32>
    %344 = vector.shape_cast %343 : vector<1x4x32xf32> to vector<4x32xf32>
    %345 = vector.shape_cast %341 : vector<4x32xf32> to vector<1x4x32xf32>
    tpu.vector_store %arg6[%342, %c0_68, %c0_69], %345 {strides = array<i32>} : memref<8x4x32xf32, #tpu.memory_space<vmem>>, vector<1x4x32xf32>,
    %346 = vector.broadcast %339 : vector<4x1xf32> to vector<4x32xf32>
    %347 = arith.mulf %346, %334 : vector<4x32xf32>
    %cst_70 = arith.constant 1.000000e+00 : f32
    %348 = vector.broadcast %cst_70 : f32 to vector<4x1xf32>
    %349 = arith.subf %348, %339 : vector<4x1xf32>
    %350 = vector.broadcast %349 : vector<4x1xf32> to vector<4x32xf32>
    %351 = arith.mulf %350, %303 : vector<4x32xf32>
    %352 = arith.addf %347, %351 : vector<4x32xf32>
    %c7_i32 = arith.constant 7 : i32
    %353 = arith.index_cast %c7_i32 : i32 to index
    %c0_71 = arith.constant 0 : index
    %c0_72 = arith.constant 0 : index
    %354 = vector.load %arg1[%353, %c0_71, %c0_72] : memref<8x4x96xf32, #tpu.memory_space<vmem>>, vector<1x4x96xf32>
    %355 = vector.shape_cast %354 : vector<1x4x96xf32> to vector<4x96xf32>
    %cst_73 = arith.constant dense<0.000000e+00> : vector<4x96xf32>
    %356 = tpu.matmul %352, %3, %cst_73 {dimension_numbers = #tpu.dot_dimension_numbers<[1], [0], [0], [1], [0, 0, 1, 1], [], []>} : vector<4x32xf32>, vector<32x96xf32>, vector<4x96xf32> -> vector<4x96xf32>
    %357 = vector.extract_strided_slice %355 {offsets = [0, 0], sizes = [4, 32], strides = [1, 1]} : vector<4x96xf32> to vector<4x32xf32>
    %358 = vector.extract_strided_slice %356 {offsets = [0, 0], sizes = [4, 32], strides = [1, 1]} : vector<4x96xf32> to vector<4x32xf32>
    %359 = arith.addf %357, %358 : vector<4x32xf32>
    %360 = arith.negf %359 : vector<4x32xf32>
    %361 = math.exp %360 : vector<4x32xf32>
    %cst_74 = arith.constant 1.000000e+00 : f32
    %362 = vector.broadcast %cst_74 : f32 to vector<4x32xf32>
    %363 = arith.addf %362, %361 : vector<4x32xf32>
    %364 = arith.divf %362, %363 : vector<4x32xf32>
    %365 = vector.extract_strided_slice %355 {offsets = [0, 32], sizes = [4, 32], strides = [1, 1]} : vector<4x96xf32> to vector<4x32xf32>
    %366 = vector.extract_strided_slice %356 {offsets = [0, 32], sizes = [4, 32], strides = [1, 1]} : vector<4x96xf32> to vector<4x32xf32>
    %367 = arith.addf %365, %366 : vector<4x32xf32>
    %368 = arith.negf %367 : vector<4x32xf32>
    %369 = math.exp %368 : vector<4x32xf32>
    %cst_75 = arith.constant 1.000000e+00 : f32
    %370 = vector.broadcast %cst_75 : f32 to vector<4x32xf32>
    %371 = arith.addf %370, %369 : vector<4x32xf32>
    %372 = arith.divf %370, %371 : vector<4x32xf32>
    %373 = vector.extract_strided_slice %355 {offsets = [0, 64], sizes = [4, 32], strides = [1, 1]} : vector<4x96xf32> to vector<4x32xf32>
    %374 = vector.extract_strided_slice %356 {offsets = [0, 64], sizes = [4, 32], strides = [1, 1]} : vector<4x96xf32> to vector<4x32xf32>
    %375 = arith.addf %374, %7 : vector<4x32xf32>
    %376 = arith.mulf %364, %375 : vector<4x32xf32>
    %377 = arith.addf %373, %376 : vector<4x32xf32>
    %378 = math.tanh %377 : vector<4x32xf32>
    %cst_76 = arith.constant 1.000000e+00 : f32
    %379 = vector.broadcast %cst_76 : f32 to vector<4x32xf32>
    %380 = arith.subf %379, %372 : vector<4x32xf32>
    %381 = arith.mulf %380, %378 : vector<4x32xf32>
    %382 = arith.mulf %372, %352 : vector<4x32xf32>
    %383 = arith.addf %381, %382 : vector<4x32xf32>
    %384 = arith.addi %8, %c7_i32 : i32
    %385 = vector.broadcast %384 : i32 to vector<4x1xi32>
    %386 = arith.cmpi slt, %385, %4 : vector<4x1xi32>
    %387 = arith.extui %386 : vector<4x1xi1> to vector<4x1xi32>
    %388 = arith.sitofp %387 : vector<4x1xi32> to vector<4x1xf32>
    %389 = vector.broadcast %388 : vector<4x1xf32> to vector<4x32xf32>
    %390 = arith.mulf %389, %383 : vector<4x32xf32>
    %391 = arith.index_cast %c7_i32 : i32 to index
    %c0_77 = arith.constant 0 : index
    %c0_78 = arith.constant 0 : index
    %392 = vector.load %arg6[%391, %c0_77, %c0_78] : memref<8x4x32xf32, #tpu.memory_space<vmem>>, vector<1x4x32xf32>
    %393 = vector.shape_cast %392 : vector<1x4x32xf32> to vector<4x32xf32>
    %394 = vector.shape_cast %390 : vector<4x32xf32> to vector<1x4x32xf32>
    tpu.vector_store %arg6[%391, %c0_77, %c0_78], %394 {strides = array<i32>} : memref<8x4x32xf32, #tpu.memory_space<vmem>>, vector<1x4x32xf32>,
    %395 = vector.broadcast %388 : vector<4x1xf32> to vector<4x32xf32>
    %396 = arith.mulf %395, %383 : vector<4x32xf32>
    %cst_79 = arith.constant 1.000000e+00 : f32
    %397 = vector.broadcast %cst_79 : f32 to vector<4x1xf32>
    %398 = arith.subf %397, %388 : vector<4x1xf32>
    %399 = vector.broadcast %398 : vector<4x1xf32> to vector<4x32xf32>
    %400 = arith.mulf %399, %352 : vector<4x32xf32>
    %401 = arith.addf %396, %400 : vector<4x32xf32>
    %c8_i32_80 = arith.constant 8 : i32
    %c0_81 = arith.constant 0 : index
    %c0_82 = arith.constant 0 : index
    %402 = vector.load %arg7[%c0_81, %c0_82] : memref<4x32xf32, #tpu.memory_space<vmem>>, vector<4x32xf32>
    tpu.vector_store %arg7[%c0_81, %c0_82], %401 {strides = array<i32>} : memref<4x32xf32, #tpu.memory_space<vmem>>, vector<4x32xf32>,
    return
  }
  func.func @transform_0(%arg0: i32) -> (i32, i32, i32) {
    %c0_i32 = arith.constant 0 : i32
    %c0_i32_0 = arith.constant 0 : i32
    %c0_i32_1 = arith.constant 0 : i32
    return %arg0, %c0_i32, %c0_i32_0 : i32, i32, i32
  }
  func.func @transform_1(%arg0: i32) -> (i32, i32) {
    %c0_i32 = arith.constant 0 : i32
    %c0_i32_0 = arith.constant 0 : i32
    %c0_i32_1 = arith.constant 0 : i32
    return %c0_i32, %c0_i32_0 : i32, i32
  }
  func.func @transform_2(%arg0: i32) -> (i32, i32) {
    %c0_i32 = arith.constant 0 : i32
    %c0_i32_0 = arith.constant 0 : i32
    %c0_i32_1 = arith.constant 0 : i32
    return %c0_i32, %c0_i32_0 : i32, i32
  }
  func.func @transform_3(%arg0: i32) -> (i32, i32) {
    %c0_i32 = arith.constant 0 : i32
    %c0_i32_0 = arith.constant 0 : i32
    %c0_i32_1 = arith.constant 0 : i32
    return %c0_i32, %c0_i32_0 : i32, i32
  }
  func.func @transform_4(%arg0: i32) -> (i32, i32) {
    %c0_i32 = arith.constant 0 : i32
    %c0_i32_0 = arith.constant 0 : i32
    %c0_i32_1 = arith.constant 0 : i32
    return %c0_i32, %c0_i32_0 : i32, i32
  }
  func.func @transform_5(%arg0: i32) -> (i32, i32, i32) {
    %c0_i32 = arith.constant 0 : i32
    %c0_i32_0 = arith.constant 0 : i32
    %c0_i32_1 = arith.constant 0 : i32
    return %arg0, %c0_i32, %c0_i32_0 : i32, i32, i32
  }
  func.func @transform_6(%arg0: i32) -> (i32, i32) {
    %c0_i32 = arith.constant 0 : i32
    %c0_i32_0 = arith.constant 0 : i32
    %c0_i32_1 = arith.constant 0 : i32
    return %c0_i32, %c0_i32_0 : i32, i32
  }
}

</mosaic_0001>

<bundles_post_ra>
// kernel: context_rnn_forward.1
= control target key start
LH: loop header
LB: loop body
LE: loop exit
PB: predicated region body
PF: predicated region fallthrough
CT: control target
= control target key end

     0   :  { %12 = vsyncpa [#allocation3], 0  ;;  %s1729_s21 = smov 0   ;;  %s2013_s0 = inlined_call_operand.vmem [shape: f32[16,4,96], index: 0, kind: input, shape index: {}]   ;;  %s2014_s1 = inlined_call_operand.vmem [shape: s32[4,1], index: 1, kind: input, shape index: {}]   ;;  %s2015_s2 = inlined_call_operand.vmem [shape: f32[32,96], index: 2, kind: input, shape index: {}]   ;;  %s2016_s3 = inlined_call_operand.vmem [shape: f32[1,32], index: 3, kind: input, shape index: {}]   ;;  %s2017_s4 = inlined_call_operand.vmem [shape: f32[4,32], index: 4, kind: input, shape index: {}]   ;;  %s2018_s5 = inlined_call_operand.vmem [shape: f32[16,4,32], index: 5, kind: output, shape index: {0}]   ;;  %s2019_s6 = inlined_call_operand.hbm [shape: f32[4,32], index: 6, kind: output, shape index: {1}]  }
   0x1 LB: > { %s1735_s22 = sadd.s32 4294967295, %s1685_s21   ;;  %p1402_p0 = scmp.ge.s32.totalorder %s1685_s21, 1  ;;  %s1685_s21 = sphi %s1729_s21, %s18_s21  }
   0x2   : > { %p212_p1 = scmp.lt.s32.totalorder %s1685_s21, 3 }
   0x4   : > { %p213_p2 = pnand %p1402_p0, %p212_p1 }
   0x5   : > { %s1740_s23 = sshll.u32 (!%p213_p2), %s1735_s22, 3  ;;  %p1407_p4 = scmp.ne.s32.totalorder (!%p213_p2), %s1735_s22, 0 }
   0x6   : > { %216 = sbr.rel (%p213_p2) target bundleno = 5487 (0x156f), region = 40  ;;  %p243_p3 = scmp.lt.s32.totalorder (!%p213_p2), %s1740_s23, 15 }
   0xb   : > { %s244_s24 = scalar_select %p243_p3, %s1740_s23, 15 }
   0xc   : > { %257 = sbr.rel (%p1407_p4) target bundleno = 19 (0x13), region = 44 }
   0xd   : > { %s1404_s25 = sshll.u32 %s244_s24, 2 }
   0xe   : > { %s1747_s28 = scalar_lea.vmem %s2013_s0, %s1404_s25  ;;  %s1752_s7 = scalar_lea.vmem %s2018_s5, %s1404_s25 }
  0x11   : > { %v258_v0 = vld [vmem:[%s2017_s4] sm:$0xf]  ;;  %vm259_vm0 = vcmask 257024  }
  0x12   : > { %260 = vst.msk [vmem:[#allocation2] sm:$0xf] %vm259_vm0, %v258_v0 }
  0x13 PF: > { %v1761_v1 = vld [vmem:[%s2015_s2 + $0x18] sm:$0xff]  ;;  %v1687_v2 = vmov 0.0   ;;  %v1767_v3 = vld [vmem:[%s2015_s2 + $0x10] sm:$0xff]  ;;  %vm1688_vm1 = vmmov 0   ;;  %v1408_v4 = vld [vmem:[%s2016_s3] ss:$0 sm:$0xff]  ;;  %v382_v12 = vstv %s1740_s23 }
  0x14   : > { %1492 = vmatprep.subr.mxu0 %v1687_v2  ;;  %1500 = vmatprep.mubr.msk.f32.mxu0 %vm1688_vm1, %v1687_v2  ;;  %s1689_s16 = smov 64   ;;  %v1780_v5 = vld [vmem:[%s2015_s2 + $0x8] sm:$0xff]  ;;  %v1789_v6 = vld [vmem:[%s2015_s2] sm:$0xff]  ;;  %vm275_vm2 = vcmask 261120   ;;  %v1690_v8 = vmov 0   ;;  %s1691_s26 = smov 32  }
  0x15   : > { %1493 = vmatpush3.msra.mxu0 %v1761_v1  ;;  %356 = vrot.lane.b32.xlu0 %v1408_v4, %s1689_s16  ;;  %v1820_v11 = vld [vmem:[%s2014_s1] sm:$0xf]  ;;  %s1692_s27 = smov 96   ;;  %s514_s29 = sadd.s32 1, %s1740_s23  ;;  %v1413_v46 = vld [vmem:[%s1747_s28 + $0x4] sm:$0xf] }
  0x16   : > { %1494 = vmatprep.subr.mxu0 %v1687_v2  ;;  %1503 = vmatprep.subr.mxu1 %v1687_v2  ;;  %vm383_vm3 = vcmp.lt.s32.totalorder %v382_v12, %v1820_v11  ;;  %v274_v16 = vld [vmem:[%s1747_s28] sm:$0xf]  ;;  %v515_v41 = vstv %s514_s29  ;;  %s643_s30 = sadd.s32 2, %s1740_s23  ;;  %s772_s8 = sadd.s32 3, %s1740_s23  ;;  %vm396_vm11 = vcmask 257024  }
  0x17   : > { %1495 = vmatpush3.msra.mxu0 %v1767_v3  ;;  %1504 = vmatpush3.msra.mxu1 %v1761_v1  ;;  %v1412_v15 = vsel %vm383_vm3, 1.0, %v1687_v2  ;;  %vm516_vm4 = vcmp.lt.s32.totalorder %v515_v41, %v1820_v11  ;;  %v644_v12 = vstv %s643_s30  ;;  %v773_v41 = vstv %s772_s8  ;;  %s901_s9 = sadd.s32 4, %s1740_s23  ;;  %s1030_s10 = sadd.s32 5, %s1740_s23 }
  0x18   : > { %1496 = vmatprep.subr.mxu0 %v1687_v2  ;;  %1505 = vmatprep.subr.mxu1 %v1687_v2  ;;  %v398_v24 = vsub.f32 1.0, %v1412_v15  ;;  %v1416_v45 = vsel %vm516_vm4, 1.0, %v1687_v2  ;;  %vm645_vm5 = vcmp.lt.s32.totalorder %v644_v12, %v1820_v11  ;;  %vm774_vm6 = vcmp.lt.s32.totalorder %v773_v41, %v1820_v11  ;;  %s1159_s11 = sadd.s32 6, %s1740_s23  ;;  %s1288_s12 = sadd.s32 7, %s1740_s23 }
  0x19   : > { %1497 = vmatpush3.msra.mxu0 %v1780_v5  ;;  %v273_v7 = vld [vmem:[#allocation2] sm:$0xf]  ;;  %1506 = vmatpush3.msra.mxu1 %v1767_v3  ;;  %v531_v54 = vsub.f32 1.0, %v1416_v45  ;;  %s1693_s23 = smov [#allocation2]   ;;  %p1584_p5 = scmp.eq.s32.totalorder %s1735_s22, 1 }
  0x1a   : > { %1498 = vmatprep.subr.mxu0 %v1687_v2  ;;  %1507 = vmatprep.subr.mxu1 %v1687_v2 }
  0x1b   : > { %1499 = vmatpush3.msra.mxu0 %v1789_v6  ;;  %1508 = vmatpush3.msra.mxu1 %v1780_v5 }
  0x1c   : > { %1501 = vmatmul.mubr.msk.f32.vlgmr.msra.gmra.mxu0 %vm275_vm2, %v273_v7  ;;  %1509 = vmatprep.subr.mxu1 %v1687_v2 }
  0x1d   : > { %1510 = vmatpush3.msra.mxu1 %v1789_v6  ;;  %1511 = vmatprep.mubr.msk.f32.mxu1 %vm1688_vm1, %v1687_v2 }
  0x1e   : > { %1514 = vmatprep.subr.mxu0 %v1687_v2  ;;  %1522 = vmatprep.mubr.msk.f32.mxu0 %vm1688_vm1, %v1687_v2 }
  0x1f   : > { %1515 = vmatpush3.msra.mxu0 %v1761_v1  ;;  %1525 = vmatprep.subr.mxu1 %v1687_v2 }
  0x20   : > { %1516 = vmatprep.subr.mxu0 %v1687_v2  ;;  %1601 = vset.pattern.permute.xlu1 %v1690_v8 }
  0x21   : > { %1517 = vmatpush3.msra.mxu0 %v1767_v3  ;;  %1602 = vset.pattern.permute.xlu0 %v1690_v8 }
  0x22   : > { %1518 = vmatprep.subr.mxu0 %v1687_v2 }
  0x23   : > { %1519 = vmatpush3.msra.mxu0 %v1780_v5 }
  0x24   : > { %1520 = vmatprep.subr.mxu0 %v1687_v2 }
  0x25   : > { %1521 = vmatpush3.msra.mxu0 %v1789_v6 }
  0x26   : > { %1536 = vmatprep.subr.mxu0 %v1687_v2 }
  0x87   : > { %v1815_v9 = vpop.permute.xlu0 %356 }
  0xdc   : > { %v345_v10 = vpop.f32.mrf.mxu0 }
  0xdd   : > { %v359_v13 = vadd.f32 %v1815_v9, %v345_v10  ;;  %v349_v17 = vadd.f32 %v345_v10, %v274_v16 }
  0xde   : > { %v1502_v14 = vpop.f32.mrf.mxu0 }
  0xdf   : > { %361 = vrot.lane.b32.xlu0 %v359_v13, %s1689_s16  ;;  %v1411_v18 = vmul.f32 -1.442695, %v349_v17  ;;  %v1418_v17 = vld [vmem:[%s1747_s28 + $0x8] sm:$0xf] }
  0xe1   : > { %1603 = vpow2.f32 %v1411_v18 }
  0xe3   : > { %388 = vperm.xlu0 %1602, %v1412_v15  }
  0xee   : > { %v1604_v19 = vpop.eup %1603 }
  0xef   : > { %v353_v20 = vadd.f32 1.0, %v1604_v19 }
  0xf1   : > { %1605 = vrcp.f32 %v353_v20 }
  0xfe   : > { %v1606_v21 = vpop.eup %1605 }
  0xff   : > { %v371_v32 = vsub.f32 1.0, %v1606_v21 }
 0x151   : > { %v362_v22 = vpop.permute.xlu0 %361 }
 0x152   : > { %v364_v23 = vmul.f32 %v1606_v21, %v362_v22 }
 0x154   : > { %366 = vrot.lane.b32.xlu1 %v364_v23, %s1689_s16 }
 0x158   : > { %401 = vperm.xlu1 %1601, %v398_v24  }
 0x15e   : > { %v389_v31 = vpop.permute.xlu0 %388 }
 0x1c6   : > { %v367_v25 = vpop.permute.xlu1 %366 }
 0x1c7   : > { %v369_v26 = vadd.f32 %v367_v25, %v274_v16  ;;  %v1421_v16 = vsel %vm645_vm5, 1.0, %v1687_v2 }
 0x1c8   : > { %v660_v25 = vsub.f32 1.0, %v1421_v16 }
 0x1c9   : > { %1607 = vtanh.f32 %v369_v26 }
 0x1d3   : > { %v402_v27 = vpop.permute.xlu1 %401 }
 0x1d4   : > { %v404_v28 = vmul.f32 %v402_v27, %v273_v7 }
 0x1d6   : > { %v1608_v29 = vpop.eup %1607  ;;  %406 = vrot.lane.b32.xlu0 %v404_v28, %s1691_s26 }
 0x1d7   : > { %373 = vrot.lane.b32.xlu1 %v1608_v29, %s1692_s27 }
 0x1db   : > { %377 = vrot.lane.b32.xlu1 %v273_v7, %s1691_s26 }
 0x248   : > { %v407_v37 = vpop.permute.xlu0 %406 }
 0x249   : > { %v374_v30 = vpop.permute.xlu1 %373 }
 0x24a   : > { %v376_v34 = vmul.f32 %v374_v30, %v371_v32 }
 0x24d   : > { %v378_v33 = vpop.permute.xlu1 %377 }
 0x24e   : > { %v380_v35 = vmul.f32 %v1606_v21, %v378_v33 }
 0x250   : > { %v381_v36 = vadd.f32 %v380_v35, %v376_v34 }
 0x252   : > { %v1830_v38 = vmul.f32 %v389_v31, %v381_v36 }
 0x254   : > { %v409_v39 = vadd.f32 %v407_v37, %v1830_v38 }
 0x256   : > { %413 = vrot.lane.b32.xlu1 %v409_v39, %s1692_s27 }
 0x2c8   : > { %v414_v40 = vpop.permute.xlu1 %413 }
 0x2c9   : > { %1512 = vmatmul.mubr.msk.f32.vlgmr.msra.gmra.mxu1 %vm275_vm2, %v414_v40 }
 0x2ca   : > { %1526 = vmatpush3.msra.mxu1 %v1761_v1  ;;  %1533 = vmatprep.mubr.msk.f32.mxu1 %vm1688_vm1, %v1687_v2 }
 0x2cb   : > { %1527 = vmatprep.subr.mxu1 %v1687_v2 }
 0x2cc   : > { %1528 = vmatpush3.msra.mxu1 %v1767_v3 }
 0x2cd   : > { %1529 = vmatprep.subr.mxu1 %v1687_v2 }
 0x2ce   : > { %1530 = vmatpush3.msra.mxu1 %v1780_v5 }
 0x2cf   : > { %1531 = vmatprep.subr.mxu1 %v1687_v2 }
 0x2d0   : > { %1532 = vmatpush3.msra.mxu1 %v1789_v6 }
 0x2d1   : > { %1547 = vmatprep.subr.mxu1 %v1687_v2 }
 0x389   : > { %v483_v42 = vpop.f32.mrf.mxu1 }
 0x38a   : > { %v494_v43 = vadd.f32 %v483_v42, %v1815_v9  ;;  %v487_v47 = vadd.f32 %v1413_v46, %v483_v42 }
 0x38b   : > { %v1513_v44 = vpop.f32.mrf.mxu1 }
 0x38c   : > { %496 = vrot.lane.b32.xlu0 %v494_v43, %s1689_s16  ;;  %v1415_v48 = vmul.f32 -1.442695, %v487_v47 }
 0x38e   : > { %1609 = vpow2.f32 %v1415_v48 }
 0x390   : > { %521 = vperm.xlu0 %1602, %v1416_v45   ;;  %v1426_v45 = vsel %vm774_vm6, 1.0, %v1687_v2 }
 0x39b   : > { %v1610_v49 = vpop.eup %1609 }
 0x39c   : > { %v491_v50 = vadd.f32 1.0, %v1610_v49 }
 0x39e   : > { %1611 = vrcp.f32 %v491_v50 }
 0x3ab   : > { %v1612_v51 = vpop.eup %1611 }
 0x3ac   : > { %v506_v59 = vsub.f32 1.0, %v1612_v51  ;;  %v512_v61 = vmul.f32 %v1612_v51, %v409_v39 }
 0x3fe   : > { %v497_v52 = vpop.permute.xlu0 %496 }
 0x3ff   : > { %v499_v53 = vmul.f32 %v1612_v51, %v497_v52 }
 0x401   : > { %501 = vrot.lane.b32.xlu1 %v499_v53, %s1689_s16 }
 0x405   : > { %534 = vperm.xlu1 %1601, %v531_v54   ;;  %v789_v54 = vsub.f32 1.0, %v1426_v45 }
 0x40b   : > { %v522_v58 = vpop.permute.xlu0 %521 }
 0x473   : > { %v502_v55 = vpop.permute.xlu1 %501 }
 0x474   : > { %v504_v56 = vadd.f32 %v1413_v46, %v502_v55  ;;  %v1423_v46 = vld [vmem:[%s1747_s28 + $0xc] sm:$0xf] }
 0x476   : > { %1613 = vtanh.f32 %v504_v56 }
 0x480   : > { %v535_v63 = vpop.permute.xlu1 %534 }
 0x481   : > { %v537_v4 = vmul.f32 %v535_v63, %v409_v39 }
 0x483   : > { %v1614_v57 = vpop.eup %1613 }
 0x484   : > { %508 = vrot.lane.b32.xlu0 %v1614_v57, %s1692_s27 }
 0x4f6   : > { %v509_v60 = vpop.permute.xlu0 %508 }
 0x4f7   : > { %v511_v62 = vmul.f32 %v509_v60, %v506_v59 }
 0x4f9   : > { %v513_v0 = vadd.f32 %v512_v61, %v511_v62 }
 0x4fb   : > { %v1853_v7 = vmul.f32 %v522_v58, %v513_v0 }
 0x4fd   : > { %v538_v8 = vadd.f32 %v537_v4, %v1853_v7 }
 0x4ff   : > { %542 = vrot.lane.b32.xlu1 %v538_v8, %s1692_s27 }
 0x571   : > { %v543_v10 = vpop.permute.xlu1 %542 }
 0x572   : > { %1523 = vmatmul.mubr.msk.f32.vlgmr.msra.gmra.mxu0 %vm275_vm2, %v543_v10 }
 0x573   : > { %1537 = vmatpush3.msra.mxu0 %v1761_v1  ;;  %1544 = vmatprep.mubr.msk.f32.mxu0 %vm1688_vm1, %v1687_v2 }
 0x574   : > { %1538 = vmatprep.subr.mxu0 %v1687_v2 }
 0x575   : > { %1539 = vmatpush3.msra.mxu0 %v1767_v3 }
 0x576   : > { %1540 = vmatprep.subr.mxu0 %v1687_v2 }
 0x577   : > { %1541 = vmatpush3.msra.mxu0 %v1780_v5 }
 0x578   : > { %1542 = vmatprep.subr.mxu0 %v1687_v2 }
 0x579   : > { %1543 = vmatpush3.msra.mxu0 %v1789_v6 }
 0x57a   : > { %1558 = vmatprep.subr.mxu0 %v1687_v2 }
 0x632   : > { %v612_v13 = vpop.f32.mrf.mxu0 }
 0x633   : > { %v623_v14 = vadd.f32 %v612_v13, %v1815_v9  ;;  %v616_v18 = vadd.f32 %v1418_v17, %v612_v13  ;;  %v902_v13 = vstv %s901_s9 }
 0x634   : > { %v1524_v15 = vpop.f32.mrf.mxu0  ;;  %vm903_vm7 = vcmp.lt.s32.totalorder %v902_v13, %v1820_v11 }
 0x635   : > { %625 = vrot.lane.b32.xlu0 %v623_v14, %s1689_s16  ;;  %v1420_v19 = vmul.f32 -1.442695, %v616_v18  ;;  %v1428_v18 = vld [vmem:[%s1747_s28 + $0x10] sm:$0xf] }
 0x637   : > { %1615 = vpow2.f32 %v1420_v19 }
 0x639   : > { %650 = vperm.xlu0 %1602, %v1421_v16  }
 0x644   : > { %v1616_v20 = vpop.eup %1615 }
 0x645   : > { %v620_v21 = vadd.f32 1.0, %v1616_v20 }
 0x647   : > { %1617 = vrcp.f32 %v620_v21 }
 0x654   : > { %v1618_v22 = vpop.eup %1617 }
 0x655   : > { %v635_v30 = vsub.f32 1.0, %v1618_v22  ;;  %v641_v32 = vmul.f32 %v1618_v22, %v538_v8 }
 0x6a7   : > { %v626_v23 = vpop.permute.xlu0 %625 }
 0x6a8   : > { %v628_v24 = vmul.f32 %v1618_v22, %v626_v23 }
 0x6aa   : > { %630 = vrot.lane.b32.xlu1 %v628_v24, %s1689_s16 }
 0x6ae   : > { %663 = vperm.xlu1 %1601, %v660_v25  }
 0x6b4   : > { %v651_v29 = vpop.permute.xlu0 %650 }
 0x71c   : > { %v631_v26 = vpop.permute.xlu1 %630 }
 0x71d   : > { %v633_v27 = vadd.f32 %v1418_v17, %v631_v26  ;;  %v1431_v17 = vsel %vm903_vm7, 1.0, %v1687_v2 }
 0x71e   : > { %v918_v26 = vsub.f32 1.0, %v1431_v17 }
 0x71f   : > { %1619 = vtanh.f32 %v633_v27 }
 0x729   : > { %v664_v34 = vpop.permute.xlu1 %663 }
 0x72a   : > { %v666_v36 = vmul.f32 %v664_v34, %v538_v8 }
 0x72c   : > { %v1620_v28 = vpop.eup %1619 }
 0x72d   : > { %637 = vrot.lane.b32.xlu0 %v1620_v28, %s1692_s27 }
 0x79f   : > { %v638_v31 = vpop.permute.xlu0 %637 }
 0x7a0   : > { %v640_v33 = vmul.f32 %v638_v31, %v635_v30 }
 0x7a2   : > { %v642_v35 = vadd.f32 %v641_v32, %v640_v33 }
 0x7a4   : > { %v1876_v37 = vmul.f32 %v651_v29, %v642_v35 }
 0x7a6   : > { %v667_v39 = vadd.f32 %v666_v36, %v1876_v37 }
 0x7a8   : > { %671 = vrot.lane.b32.xlu1 %v667_v39, %s1692_s27 }
 0x81a   : > { %v672_v40 = vpop.permute.xlu1 %671 }
 0x81b   : > { %1534 = vmatmul.mubr.msk.f32.vlgmr.msra.gmra.mxu1 %vm275_vm2, %v672_v40 }
 0x81c   : > { %1548 = vmatpush3.msra.mxu1 %v1761_v1  ;;  %1555 = vmatprep.mubr.msk.f32.mxu1 %vm1688_vm1, %v1687_v2 }
 0x81d   : > { %1549 = vmatprep.subr.mxu1 %v1687_v2 }
 0x81e   : > { %1550 = vmatpush3.msra.mxu1 %v1767_v3 }
 0x81f   : > { %1551 = vmatprep.subr.mxu1 %v1687_v2 }
 0x820   : > { %1552 = vmatpush3.msra.mxu1 %v1780_v5 }
 0x821   : > { %1553 = vmatprep.subr.mxu1 %v1687_v2 }
 0x822   : > { %1554 = vmatpush3.msra.mxu1 %v1789_v6 }
 0x823   : > { %1569 = vmatprep.subr.mxu1 %v1687_v2 }
 0x8db   : > { %v741_v42 = vpop.f32.mrf.mxu1 }
 0x8dc   : > { %v752_v43 = vadd.f32 %v741_v42, %v1815_v9  ;;  %v745_v47 = vadd.f32 %v1423_v46, %v741_v42 }
 0x8dd   : > { %v1535_v44 = vpop.f32.mrf.mxu1 }
 0x8de   : > { %754 = vrot.lane.b32.xlu0 %v752_v43, %s1689_s16  ;;  %v1425_v48 = vmul.f32 -1.442695, %v745_v47  ;;  %v1031_v43 = vstv %s1030_s10 }
 0x8df   : > { %vm1032_vm8 = vcmp.lt.s32.totalorder %v1031_v43, %v1820_v11  ;;  %v1289_v43 = vstv %s1288_s12 }
 0x8e0   : > { %1621 = vpow2.f32 %v1425_v48  ;;  %vm1290_vm10 = vcmp.lt.s32.totalorder %v1289_v43, %v1820_v11 }
 0x8e2   : > { %779 = vperm.xlu0 %1602, %v1426_v45  }
 0x8ed   : > { %v1622_v49 = vpop.eup %1621 }
 0x8ee   : > { %v749_v50 = vadd.f32 1.0, %v1622_v49 }
 0x8f0   : > { %1623 = vrcp.f32 %v749_v50 }
 0x8fd   : > { %v1624_v51 = vpop.eup %1623 }
 0x8fe   : > { %v764_v59 = vsub.f32 1.0, %v1624_v51  ;;  %v770_v61 = vmul.f32 %v1624_v51, %v667_v39 }
 0x950   : > { %v755_v52 = vpop.permute.xlu0 %754 }
 0x951   : > { %v757_v53 = vmul.f32 %v1624_v51, %v755_v52 }
 0x953   : > { %759 = vrot.lane.b32.xlu1 %v757_v53, %s1689_s16 }
 0x957   : > { %792 = vperm.xlu1 %1601, %v789_v54  }
 0x95d   : > { %v780_v58 = vpop.permute.xlu0 %779 }
 0x9c5   : > { %v760_v55 = vpop.permute.xlu1 %759 }
 0x9c6   : > { %v762_v56 = vadd.f32 %v1423_v46, %v760_v55  ;;  %v1433_v46 = vld [vmem:[%s1747_s28 + $0x14] sm:$0xf] }
 0x9c8   : > { %1625 = vtanh.f32 %v762_v56 }
 0x9d2   : > { %v793_v63 = vpop.permute.xlu1 %792 }
 0x9d3   : > { %v795_v4 = vmul.f32 %v793_v63, %v667_v39 }
 0x9d5   : > { %v1626_v57 = vpop.eup %1625 }
 0x9d6   : > { %766 = vrot.lane.b32.xlu0 %v1626_v57, %s1692_s27 }
 0xa48   : > { %v767_v60 = vpop.permute.xlu0 %766 }
 0xa49   : > { %v769_v62 = vmul.f32 %v767_v60, %v764_v59 }
 0xa4b   : > { %v771_v0 = vadd.f32 %v770_v61, %v769_v62 }
 0xa4d   : > { %v1899_v8 = vmul.f32 %v780_v58, %v771_v0 }
 0xa4f   : > { %v796_v10 = vadd.f32 %v795_v4, %v1899_v8 }
 0xa51   : > { %800 = vrot.lane.b32.xlu1 %v796_v10, %s1692_s27 }
 0xac3   : > { %v801_v12 = vpop.permute.xlu1 %800 }
 0xac4   : > { %1545 = vmatmul.mubr.msk.f32.vlgmr.msra.gmra.mxu0 %vm275_vm2, %v801_v12  ;;  %v1160_v12 = vstv %s1159_s11 }
 0xac5   : > { %1559 = vmatpush3.msra.mxu0 %v1761_v1  ;;  %1566 = vmatprep.mubr.msk.f32.mxu0 %vm1688_vm1, %v1687_v2  ;;  %vm1161_vm9 = vcmp.lt.s32.totalorder %v1160_v12, %v1820_v11 }
 0xac6   : > { %1560 = vmatprep.subr.mxu0 %v1687_v2 }
 0xac7   : > { %1561 = vmatpush3.msra.mxu0 %v1767_v3 }
 0xac8   : > { %1562 = vmatprep.subr.mxu0 %v1687_v2 }
 0xac9   : > { %1563 = vmatpush3.msra.mxu0 %v1780_v5 }
 0xaca   : > { %1564 = vmatprep.subr.mxu0 %v1687_v2 }
 0xacb   : > { %1565 = vmatpush3.msra.mxu0 %v1789_v6 }
 0xb84   : > { %v870_v14 = vpop.f32.mrf.mxu0 }
 0xb85   : > { %v881_v15 = vadd.f32 %v870_v14, %v1815_v9  ;;  %v874_v19 = vadd.f32 %v1428_v18, %v870_v14 }
 0xb86   : > { %v1546_v16 = vpop.f32.mrf.mxu0 }
 0xb87   : > { %883 = vrot.lane.b32.xlu0 %v881_v15, %s1689_s16  ;;  %v1430_v20 = vmul.f32 -1.442695, %v874_v19  ;;  %v1441_v16 = vsel %vm1161_vm9, 1.0, %v1687_v2 }
 0xb89   : > { %1627 = vpow2.f32 %v1430_v20 }
 0xb8b   : > { %908 = vperm.xlu0 %1602, %v1431_v17   ;;  %v1438_v17 = vld [vmem:[%s1747_s28 + $0x18] sm:$0xf] }
 0xb96   : > { %v1628_v21 = vpop.eup %1627 }
 0xb97   : > { %v878_v22 = vadd.f32 1.0, %v1628_v21 }
 0xb99   : > { %1629 = vrcp.f32 %v878_v22 }
 0xba6   : > { %v1630_v23 = vpop.eup %1629 }
 0xba7   : > { %v893_v31 = vsub.f32 1.0, %v1630_v23  ;;  %v899_v33 = vmul.f32 %v1630_v23, %v796_v10 }
 0xbf9   : > { %v884_v24 = vpop.permute.xlu0 %883 }
 0xbfa   : > { %v886_v25 = vmul.f32 %v1630_v23, %v884_v24 }
 0xbfc   : > { %888 = vrot.lane.b32.xlu1 %v886_v25, %s1689_s16  ;;  %v1176_v25 = vsub.f32 1.0, %v1441_v16 }
 0xc00   : > { %921 = vperm.xlu1 %1601, %v918_v26  }
 0xc06   : > { %v909_v30 = vpop.permute.xlu0 %908 }
 0xc6e   : > { %v889_v27 = vpop.permute.xlu1 %888 }
 0xc6f   : > { %v891_v28 = vadd.f32 %v1428_v18, %v889_v27 }
 0xc71   : > { %1631 = vtanh.f32 %v891_v28 }
 0xc7b   : > { %v922_v35 = vpop.permute.xlu1 %921 }
 0xc7c   : > { %v924_v39 = vmul.f32 %v922_v35, %v796_v10 }
 0xc7e   : > { %v1632_v29 = vpop.eup %1631 }
 0xc7f   : > { %895 = vrot.lane.b32.xlu0 %v1632_v29, %s1692_s27 }
 0xcf1   : > { %v896_v32 = vpop.permute.xlu0 %895 }
 0xcf2   : > { %v898_v34 = vmul.f32 %v896_v32, %v893_v31 }
 0xcf4   : > { %v900_v36 = vadd.f32 %v899_v33, %v898_v34 }
 0xcf6   : > { %v1921_v40 = vmul.f32 %v909_v30, %v900_v36 }
 0xcf8   : > { %v925_v41 = vadd.f32 %v924_v39, %v1921_v40 }
 0xcfa   : > { %929 = vrot.lane.b32.xlu1 %v925_v41, %s1692_s27 }
 0xd6c   : > { %v930_v42 = vpop.permute.xlu1 %929 }
 0xd6d   : > { %1556 = vmatmul.mubr.msk.f32.vlgmr.msra.gmra.mxu1 %vm275_vm2, %v930_v42 }
 0xd6e   : > { %1570 = vmatpush3.msra.mxu1 %v1761_v1  ;;  %1577 = vmatprep.mubr.msk.f32.mxu1 %vm1688_vm1, %v1687_v2 }
 0xd6f   : > { %1571 = vmatprep.subr.mxu1 %v1687_v2 }
 0xd70   : > { %1572 = vmatpush3.msra.mxu1 %v1767_v3  ;;  %v1436_v3 = vsel %vm1032_vm8, 1.0, %v1687_v2 }
 0xd71   : > { %1573 = vmatprep.subr.mxu1 %v1687_v2  ;;  %v1047_v52 = vsub.f32 1.0, %v1436_v3 }
 0xd72   : > { %1574 = vmatpush3.msra.mxu1 %v1780_v5 }
 0xd73   : > { %1575 = vmatprep.subr.mxu1 %v1687_v2 }
 0xd74   : > { %1576 = vmatpush3.msra.mxu1 %v1789_v6 }
 0xe2d   : > { %v999_v44 = vpop.f32.mrf.mxu1 }
 0xe2e   : > { %v1010_v1 = vadd.f32 %v999_v44, %v1815_v9  ;;  %v1003_v47 = vadd.f32 %v1433_v46, %v999_v44 }
 0xe2f   : > { %v1557_v45 = vpop.f32.mrf.mxu1 }
 0xe30   : > { %1012 = vrot.lane.b32.xlu0 %v1010_v1, %s1689_s16  ;;  %v1435_v5 = vmul.f32 -1.442695, %v1003_v47 }
 0xe32   : > { %1633 = vpow2.f32 %v1435_v5 }
 0xe34   : > { %1037 = vperm.xlu0 %1602, %v1436_v3   ;;  %v1446_v3 = vsel %vm1290_vm10, 1.0, %v1687_v2 }
 0xe3f   : > { %v1634_v48 = vpop.eup %1633 }
 0xe40   : > { %v1007_v49 = vadd.f32 1.0, %v1634_v48 }
 0xe42   : > { %1635 = vrcp.f32 %v1007_v49 }
 0xe4f   : > { %v1636_v6 = vpop.eup %1635 }
 0xe50   : > { %v1022_v57 = vsub.f32 1.0, %v1636_v6  ;;  %v1028_v59 = vmul.f32 %v1636_v6, %v925_v41 }
 0xea2   : > { %v1013_v50 = vpop.permute.xlu0 %1012 }
 0xea3   : > { %v1015_v51 = vmul.f32 %v1636_v6, %v1013_v50 }
 0xea5   : > { %1017 = vrot.lane.b32.xlu1 %v1015_v51, %s1689_s16 }
 0xea9   : > { %1050 = vperm.xlu1 %1601, %v1047_v52  }
 0xeaf   : > { %v1038_v56 = vpop.permute.xlu0 %1037 }
 0xf17   : > { %v1018_v53 = vpop.permute.xlu1 %1017 }
 0xf18   : > { %v1020_v54 = vadd.f32 %v1433_v46, %v1018_v53  ;;  %v1443_v46 = vld [vmem:[%s1747_s28 + $0x1c] sm:$0xf]  ;;  %s1334_s28 = sshll.u32 %s1693_s23, 4  ;;  %s1335_s28 = int_to_ptr.vmem [resolvable:$true] %s1334_s28 }
 0xf19   : > { %s1651_s13 = scalar_lea.vmem %s1335_s28, 64  ;;  %p1658_p9 = scmp.lt.s32.totalorder %s1335_s28, %s1335_s28 }
 0xf1a   : > { %1637 = vtanh.f32 %v1020_v54  ;;  %p1652_p6 = scmp.ne.s32.totalorder %s1335_s28, %s1651_s13  ;;  %p1659_p10 = scmp.lt.s32.totalorder %s1651_s13, %s1651_s13 }
 0xf1c   : > { %p1653_p7 = pnand %p1652_p6, %p1584_p5  ;;  %p1660_p11 = por %p1659_p10, %p1658_p9 }
 0xf1e   : > { %p1654_p8 = pneg %p1653_p7 }
 0xf20   : > { %p1661_p12 = pnand %p1660_p11, %p1654_p8 }
 0xf24   : > { %v1051_v61 = vpop.permute.xlu1 %1050 }
 0xf25   : > { %v1053_v63 = vmul.f32 %v1051_v61, %v925_v41 }
 0xf27   : > { %v1638_v55 = vpop.eup %1637 }
 0xf28   : > { %1024 = vrot.lane.b32.xlu0 %v1638_v55, %s1692_s27 }
 0xf9a   : > { %v1025_v58 = vpop.permute.xlu0 %1024 }
 0xf9b   : > { %v1027_v60 = vmul.f32 %v1025_v58, %v1022_v57 }
 0xf9d   : > { %v1029_v62 = vadd.f32 %v1028_v59, %v1027_v60 }
 0xf9f   : > { %v1943_v0 = vmul.f32 %v1038_v56, %v1029_v62 }
 0xfa1   : > { %v1054_v4 = vadd.f32 %v1053_v63, %v1943_v0 }
 0xfa3   : > { %1058 = vrot.lane.b32.xlu1 %v1054_v4, %s1692_s27 }
0x1015   : > { %v1059_v10 = vpop.permute.xlu1 %1058 }
0x1016   : > { %1567 = vmatmul.mubr.msk.f32.vlgmr.msra.gmra.mxu0 %vm275_vm2, %v1059_v10 }
0x10d6   : > { %v1128_v13 = vpop.f32.mrf.mxu0 }
0x10d7   : > { %v1139_v14 = vadd.f32 %v1128_v13, %v1815_v9  ;;  %v1132_v18 = vadd.f32 %v1438_v17, %v1128_v13 }
0x10d8   : > { %v1568_v15 = vpop.f32.mrf.mxu0 }
0x10d9   : > { %1141 = vrot.lane.b32.xlu0 %v1139_v14, %s1689_s16  ;;  %v1440_v19 = vmul.f32 -1.442695, %v1132_v18 }
0x10db   : > { %1639 = vpow2.f32 %v1440_v19 }
0x10dd   : > { %1166 = vperm.xlu0 %1602, %v1441_v16  }
0x10e8   : > { %v1640_v20 = vpop.eup %1639 }
0x10e9   : > { %v1136_v21 = vadd.f32 1.0, %v1640_v20 }
0x10eb   : > { %1641 = vrcp.f32 %v1136_v21 }
0x10f8   : > { %v1642_v22 = vpop.eup %1641 }
0x10f9   : > { %v1151_v30 = vsub.f32 1.0, %v1642_v22  ;;  %v1157_v32 = vmul.f32 %v1642_v22, %v1054_v4 }
0x114b   : > { %v1142_v23 = vpop.permute.xlu0 %1141 }
0x114c   : > { %v1144_v24 = vmul.f32 %v1642_v22, %v1142_v23 }
0x114e   : > { %1146 = vrot.lane.b32.xlu1 %v1144_v24, %s1689_s16 }
0x1152   : > { %1179 = vperm.xlu1 %1601, %v1176_v25  }
0x1158   : > { %v1167_v29 = vpop.permute.xlu0 %1166 }
0x11c0   : > { %v1147_v26 = vpop.permute.xlu1 %1146 }
0x11c1   : > { %v1149_v27 = vadd.f32 %v1438_v17, %v1147_v26 }
0x11c3   : > { %1643 = vtanh.f32 %v1149_v27 }
0x11cd   : > { %v1180_v34 = vpop.permute.xlu1 %1179 }
0x11ce   : > { %v1182_v36 = vmul.f32 %v1180_v34, %v1054_v4 }
0x11d0   : > { %v1644_v28 = vpop.eup %1643 }
0x11d1   : > { %1153 = vrot.lane.b32.xlu0 %v1644_v28, %s1692_s27 }
0x1243   : > { %v1154_v31 = vpop.permute.xlu0 %1153 }
0x1244   : > { %v1156_v33 = vmul.f32 %v1154_v31, %v1151_v30 }
0x1246   : > { %v1158_v35 = vadd.f32 %v1157_v32, %v1156_v33 }
0x1248   : > { %v1169_v39 = vmul.f32 %v1167_v29, %v1158_v35 }
0x124a   : > { %v1183_v41 = vadd.f32 %v1182_v36, %v1169_v39 }
0x124c   : > { %1187 = vrot.lane.b32.xlu1 %v1183_v41, %s1692_s27 }
0x12be   : > { %v1188_v42 = vpop.permute.xlu1 %1187 }
0x12bf   : > { %1578 = vmatmul.mubr.msk.f32.vlgmr.msra.gmra.mxu1 %vm275_vm2, %v1188_v42 }
0x137f   : > { %v1257_v44 = vpop.f32.mrf.mxu1 }
0x1380   : > { %v1268_v1 = vadd.f32 %v1257_v44, %v1815_v9  ;;  %v1261_v47 = vadd.f32 %v1443_v46, %v1257_v44  ;;  %v1305_v9 = vsub.f32 1.0, %v1446_v3 }
0x1381   : > { %v1579_v45 = vpop.f32.mrf.mxu1 }
0x1382   : > { %1270 = vrot.lane.b32.xlu0 %v1268_v1, %s1689_s16  ;;  %v1445_v5 = vmul.f32 -1.442695, %v1261_v47 }
0x1384   : > { %1645 = vpow2.f32 %v1445_v5 }
0x1386   : > { %1295 = vperm.xlu0 %1602, %v1446_v3  }
0x1391   : > { %v1646_v48 = vpop.eup %1645 }
0x1392   : > { %v1265_v49 = vadd.f32 1.0, %v1646_v48 }
0x1394   : > { %1647 = vrcp.f32 %v1265_v49 }
0x13a1   : > { %v1648_v6 = vpop.eup %1647 }
0x13a2   : > { %v1280_v56 = vsub.f32 1.0, %v1648_v6  ;;  %v1286_v57 = vmul.f32 %v1648_v6, %v1183_v41 }
0x13f4   : > { %v1271_v50 = vpop.permute.xlu0 %1270 }
0x13f5   : > { %v1273_v51 = vmul.f32 %v1648_v6, %v1271_v50 }
0x13f7   : > { %1275 = vrot.lane.b32.xlu1 %v1273_v51, %s1689_s16 }
0x13fb   : > { %1308 = vperm.xlu1 %1601, %v1305_v9  }
0x13ff   : > { %526 = vrot.lane.b32.xlu1 %v1853_v7, %s1692_s27 }
0x1401   : > { %v1296_v55 = vpop.permute.xlu0 %1295 }
0x1403   : > { %784 = vrot.lane.b32.xlu1 %v1899_v8, %s1692_s27 }
0x1407   : > { %1042 = vrot.lane.b32.xlu1 %v1943_v0, %s1692_s27 }
0x1469   : > { %v1276_v2 = vpop.permute.xlu1 %1275 }
0x146a   : > { %v1278_v11 = vadd.f32 %v1443_v46, %v1276_v2 }
0x146c   : > { %1649 = vtanh.f32 %v1278_v11 }
0x1476   : > { %v1309_v52 = vpop.permute.xlu1 %1308 }
0x1479   : > { %v1650_v53 = vpop.eup %1649 }
0x147a   : > { %1282 = vrot.lane.b32.xlu0 %v1650_v53, %s1692_s27  ;;  %v527_v54 = vpop.permute.xlu1 %526 }
0x147b   : > { %1417 = vst.msk [vmem:[%s1752_s7 + $0x4] sm:$0xf] %vm396_vm11, %v527_v54 }
0x147e   : > { %393 = vrot.lane.b32.xlu0 %v1830_v38, %s1692_s27  ;;  %v785_v7 = vpop.permute.xlu1 %784 }
0x147f   : > { %1427 = vst.msk [vmem:[%s1752_s7 + $0xc] sm:$0xf] %vm396_vm11, %v785_v7 }
0x1482   : > { %655 = vrot.lane.b32.xlu0 %v1876_v37, %s1692_s27  ;;  %v1043_v8 = vpop.permute.xlu1 %1042  ;;  %v1311_v37 = vmul.f32 %v1309_v52, %v1183_v41 }
0x1483   : > { %1437 = vst.msk [vmem:[%s1752_s7 + $0x14] sm:$0xf] %vm396_vm11, %v1043_v8 }
0x1486   : > { %913 = vrot.lane.b32.xlu0 %v1921_v40, %s1692_s27 }
0x148a   : > { %1171 = vrot.lane.b32.xlu0 %v1169_v39, %s1692_s27 }
0x14ec   : > { %v1283_v38 = vpop.permute.xlu0 %1282 }
0x14ed   : > { %v1285_v58 = vmul.f32 %v1283_v38, %v1280_v56 }
0x14ef   : > { %v1287_v59 = vadd.f32 %v1286_v57, %v1285_v58 }
0x14f0   : > { %v394_v60 = vpop.permute.xlu0 %393 }
0x14f1   : > { %v1298_v61 = vmul.f32 %v1296_v55, %v1287_v59  ;;  %397 = vst.msk [vmem:[%s1752_s7] sm:$0xf] %vm396_vm11, %v394_v60 }
0x14f3   : > { %v1312_v62 = vadd.f32 %v1311_v37, %v1298_v61 }
0x14f4   : > { %v656_v63 = vpop.permute.xlu0 %655 }
0x14f5   : > { %1422 = vst.msk [vmem:[%s1752_s7 + $0x8] sm:$0xf] %vm396_vm11, %v656_v63  ;;  %1314 = vrot.lane.b32.xlu1 %v1312_v62, %s1692_s27 }
0x14f8   : > { %v914_v40 = vpop.permute.xlu0 %913 }
0x14f9   : > { %1432 = vst.msk [vmem:[%s1752_s7 + $0x10] sm:$0xf] %vm396_vm11, %v914_v40  ;;  %1300 = vrot.lane.b32.xlu1 %v1298_v61, %s1692_s27 }
0x14fc   : > { %v1172_v0 = vpop.permute.xlu0 %1171 }
0x14fd   : > { %1442 = vst.msk [vmem:[%s1752_s7 + $0x18] sm:$0xf] %vm396_vm11, %v1172_v0 }
0x1567   : > { %v1315_v4 = vpop.permute.xlu1 %1314 }
0x1568   : > { %1317 = vst.msk [vmem:[#allocation2] sm:$0xf] %vm396_vm11, %v1315_v4 }
0x1569   : > { %1664 = shalt.err (!%p1661_p12)
}
0x156a   : > { %1581 = dma.vmem_to_hbm [thread:$0]  (%p1584_p5), %s1335_s28, 64, %s2019_s6, [#allocation3]  }
0x156b   : > { %v1301_v10 = vpop.permute.xlu1 %1300 }
0x156c   : > { %1447 = vst.msk [vmem:[%s1752_s7 + $0x1c] sm:$0xf] %vm396_vm11, %v1301_v10 }
0x156d   : > { %1680 = dma.done.wait (%p1584_p5), [#allocation3], 64  }
0x156e   : > { %1682 = vsyncadd (%p1584_p5), [#allocation3], 4294967232 }
0x156f PF: > { %s18_s21 = sadd.s32 1, %s1685_s21  }
0x1570   : > { %p15_p13 = scmp.ge.s32.totalorder %s18_s21, 4  }
0x1572   :  { %17 = sbr.rel (!%p15_p13) target bundleno = 1 (0x1), region = 97 }
0x1577   :  { %1355 = vsyncpa [#allocation3], 1 }
0x1578   :  { %1357 = vsyncpa [#allocation3 + $0x1], 1 }

</bundles_post_ra>
